<compile_context>
chip_gen: v6e
topology: v6e:2x2x1
jax: 0.10.0
libtpu: 0.0.40
codegen_flags: <defaults>
</compile_context>

<pallas_src>
import numpy as np
import jax
import jax.numpy as jnp
from jax import lax
from jax.experimental import pallas as pl
from jax.experimental.pallas import tpu as pltpu

_LANE = 128
_SUBLANE = 8


def _round_up(a, m):
    return ((a + m - 1) // m) * m


def _gather_kernel(x_ref, idx_ref, o_ref):
    """Select-accumulate gather over one (row-tile, K-tile, N-chunk) block."""
    ni = pl.program_id(2)
    tr, nc = x_ref.shape            # row tile, N chunk (static block shape)
    base = ni * nc                  # global column offset of this N chunk
    zero = jnp.zeros((), o_ref.dtype)

    def row_body(rb, carry):
        r0 = pl.multiple_of(rb * _SUBLANE, _SUBLANE)
        # Index relative to this chunk -> compare against compile-time constants.
        idx_rel = idx_ref[pl.ds(r0, _SUBLANE), :] - base      # (8, tk) int32
        x_c = x_ref[pl.ds(r0, _SUBLANE), :]                   # (8, nc)
        prev = o_ref[pl.ds(r0, _SUBLANE), :]                  # (8, tk)
        # Carry across N chunks; first chunk starts from 0 (prev is garbage and
        # is selected away -- no separate zero-fill pass over the block).
        acc = jnp.where(ni == 0, zero, prev)
        # Static unroll over the chunk's source columns: compare-with-immediate
        # + lane-broadcast of x[:, n] + select.  Pure VPU work, no XLU reduce.
        for n in range(nc):
            acc = jnp.where(idx_rel == n, x_c[:, n:n + 1], acc)
        o_ref[pl.ds(r0, _SUBLANE), :] = acc
        return carry

    lax.fori_loop(0, tr // _SUBLANE, row_body, 0)


def _gather_rows(x2, i2):
    """out[r, k] = x2[r, i2[r, k]]  with x2:(R,N), i2:(R,K) int32."""
    r, n = x2.shape
    k = i2.shape[-1]

    # Pad K (output lane dim) to a multiple of 128 -> unmasked full-width stores.
    kp = _round_up(max(k, 1), _LANE)
    # Pad N to a multiple of 128 so N chunks divide the array exactly.
    np_ = _round_up(max(n, 1), _LANE)

    # N chunk per grid step: keeps the in-kernel static column unroll small.
    nc = 256 if np_ % 256 == 0 else _LANE

    # Row tile: multiple of 8 rows; keep >=2 parallel grid steps when possible
    # (megacore on v7x) and cap at 64 rows for balance / low padding waste.
    r8 = _round_up(max(r, 1), _SUBLANE)
    if r8 >= 128:
        tr = 64
    elif r8 >= 16:
        tr = _round_up((r8 + 1) // 2, _SUBLANE)
    else:
        tr = r8
    rp = _round_up(r8, tr)

    # K tile (second parallel grid axis): bounds idx/out VMEM blocks (important
    # on v7x's 64 MiB / v5e's 16 MiB scoped VMEM) and provides parallel steps
    # when there is only one row tile.
    if rp // tr <= 1 and kp >= 2 * _LANE:
        tk = _LANE
    elif kp % 512 == 0:
        tk = 512
    elif kp % 256 == 0:
        tk = 256
    else:
        tk = _LANE

    if (rp, np_) != (r, n):
        x2 = jnp.pad(x2, ((0, rp - r), (0, np_ - n)))
    if (rp, kp) != (r, k):
        i2 = jnp.pad(i2, ((0, rp - r), (0, kp - k)))   # pad idx with 0 (valid)

    out = pl.pallas_call(
        _gather_kernel,
        out_shape=jax.ShapeDtypeStruct((rp, kp), x2.dtype),
        grid=(rp // tr, kp // tk, np_ // nc),
        in_specs=[
            pl.BlockSpec((tr, nc), lambda ri, ki, ni: (ri, ni)),
            pl.BlockSpec((tr, tk), lambda ri, ki, ni: (ri, ki)),
        ],
        out_specs=pl.BlockSpec((tr, tk), lambda ri, ki, ni: (ri, ki)),
        compiler_params=pltpu.CompilerParams(
            dimension_semantics=("parallel", "parallel", "arbitrary")),
    )(x2, i2)
    return out[:r, :k]


def pallas_gather(x, idx, dim):
    """JAX/Pallas equivalent of torch.gather(x, dim, idx)."""
    ndim = x.ndim
    dim = dim % ndim

    if idx.size == 0:
        return jnp.zeros(idx.shape, dtype=x.dtype)

    # torch.gather allows idx smaller than x on every non-gather dim.
    if any(idx.shape[d] != x.shape[d] for d in range(ndim) if d != dim):
        x = x[tuple(slice(None) if d == dim else slice(0, idx.shape[d])
                    for d in range(ndim))]

    is_bool = (x.dtype == jnp.bool_)
    if is_bool:
        x = x.astype(jnp.int8)      # avoid bool promotion surprises in-kernel

    last = (dim == ndim - 1)
    if last:
        xs, ig = x, idx
        perm = list(range(ndim))
    else:
        # TODO(synk): replace this HBM transpose round trip with a sublane-gather
        # kernel variant (gather axis on sublanes) for non-last-dim gathers.
        perm = [d for d in range(ndim) if d != dim] + [dim]
        xs = jnp.transpose(x, perm)
        ig = jnp.transpose(idx, perm)

    lead = ig.shape[:-1]
    r = int(np.prod(lead)) if lead else 1
    n = xs.shape[-1]
    k = ig.shape[-1]

    out2 = _gather_rows(xs.reshape(r, n), ig.reshape(r, k).astype(jnp.int32))
    out = out2.reshape(*lead, k)
    if not last:
        out = jnp.transpose(out, list(np.argsort(perm)))
    if is_bool:
        out = out.astype(jnp.bool_)
    return out


if __name__ == "__main__":
    key = jax.random.PRNGKey(0)
    kx1, ki1, kx2, ki2, kx3, ki3 = jax.random.split(key, 6)

    # Case 1: 2-D gather along dim=1 (GatherModule(dim=1))
    M, N, K = 16, 128, 128
    x = jax.random.normal(kx1, (M, N), dtype=jnp.float32)
    idx = jax.random.randint(ki1, (M, K), 0, N, dtype=jnp.int32)
    out = jax.block_until_ready(pallas_gather(x, idx, dim=1))
    ref = jnp.take_along_axis(x, idx, axis=1)
    assert out.shape == idx.shape
    np.testing.assert_array_equal(np.asarray(out), np.asarray(ref))

    # Case 2: 3-D gather along dim=2, non-aligned sizes (exercises padding)
    B, S, H, Kh = 2, 8, 96, 40
    x3 = jax.random.normal(kx2, (B, S, H), dtype=jnp.float32)
    idx3 = jax.random.randint(ki2, (B, S, Kh), 0, H, dtype=jnp.int32)
    out3 = jax.block_until_ready(pallas_gather(x3, idx3, dim=2))
    ref3 = jnp.take_along_axis(x3, idx3, axis=2)
    assert out3.shape == idx3.shape
    np.testing.assert_array_equal(np.asarray(out3), np.asarray(ref3))

    # Case 3: 2-D gather along dim=0 (exercises the transpose path)
    P, Q, K0 = 64, 16, 32
    x0 = jax.random.normal(kx3, (P, Q), dtype=jnp.float32)
    idx0 = jax.random.randint(ki3, (K0, Q), 0, P, dtype=jnp.int32)
    out0 = jax.block_until_ready(pallas_gather(x0, idx0, dim=0))
    ref0 = jnp.take_along_axis(x0, idx0, axis=0)
    assert out0.shape == idx0.shape
    np.testing.assert_array_equal(np.asarray(out0), np.asarray(ref0))

    print("KERNEL_OK")
</pallas_src>

<mosaic_0001>
module attributes {stable_mosaic.version = 11 : i64} {
  func.func @_gather_kernel(%arg0: i32, %arg1: i32, %arg2: i32, %arg3: memref<8x128xf32, #tpu.memory_space<vmem>>, %arg4: memref<8x128xi32, #tpu.memory_space<vmem>>, %arg5: memref<8x128xf32, #tpu.memory_space<vmem>>) attributes {dimension_semantics = [#tpu.dimension_semantics<parallel>, #tpu.dimension_semantics<parallel>, #tpu.dimension_semantics<arbitrary>], iteration_bounds = array<i64: 2, 1, 1>, scalar_prefetch = 0 : i64, scratch_operands = 0 : i64, tpu.core_type = #tpu.core_type<tc>, window_params = [{transform_indices = @transform_0, window_bounds = array<i64: 8, 128>}, {transform_indices = @transform_1, window_bounds = array<i64: 8, 128>}, {transform_indices = @transform_2, window_bounds = array<i64: 8, 128>}]} {
    %c128_i32 = arith.constant 128 : i32
    %0 = arith.muli %arg2, %c128_i32 : i32
    %cst = arith.constant 0.000000e+00 : f32
    %c0_i32 = arith.constant 0 : i32
    %c8_i32 = arith.constant 8 : i32
    %1 = arith.muli %c0_i32, %c8_i32 : i32
    %2 = tpu.assume_multiple %1, 8 : i32
    %3 = arith.index_cast %2 : i32 to index
    %c0 = arith.constant 0 : index
    %4 = vector.load %arg4[%3, %c0] : memref<8x128xi32, #tpu.memory_space<vmem>>, vector<8x128xi32>
    %5 = vector.broadcast %0 : i32 to vector<8x128xi32>
    %6 = arith.subi %4, %5 : vector<8x128xi32>
    %7 = arith.index_cast %2 : i32 to index
    %c0_0 = arith.constant 0 : index
    %8 = vector.load %arg3[%7, %c0_0] : memref<8x128xf32, #tpu.memory_space<vmem>>, vector<8x128xf32>
    %9 = arith.index_cast %2 : i32 to index
    %c0_1 = arith.constant 0 : index
    %10 = vector.load %arg5[%9, %c0_1] : memref<8x128xf32, #tpu.memory_space<vmem>>, vector<8x128xf32>
    %c0_i32_2 = arith.constant 0 : i32
    %11 = arith.cmpi eq, %arg2, %c0_i32_2 : i32
    %12 = vector.broadcast %cst : f32 to vector<8x128xf32>
    %13 = arith.select %11, %12, %10 : vector<8x128xf32>
    %c0_i32_3 = arith.constant 0 : i32
    %14 = vector.broadcast %c0_i32_3 : i32 to vector<8x128xi32>
    %15 = arith.cmpi eq, %6, %14 : vector<8x128xi32>
    %16 = vector.extract_strided_slice %8 {offsets = [0, 0], sizes = [8, 1], strides = [1, 1]} : vector<8x128xf32> to vector<8x1xf32>
    %17 = vector.shape_cast %16 : vector<8x1xf32> to vector<8x1xf32>
    %18 = vector.broadcast %17 : vector<8x1xf32> to vector<8x128xf32>
    %19 = arith.select %15, %18, %13 : vector<8x128xi1>, vector<8x128xf32>
    %c1_i32 = arith.constant 1 : i32
    %20 = vector.broadcast %c1_i32 : i32 to vector<8x128xi32>
    %21 = arith.cmpi eq, %6, %20 : vector<8x128xi32>
    %22 = vector.extract_strided_slice %8 {offsets = [0, 1], sizes = [8, 1], strides = [1, 1]} : vector<8x128xf32> to vector<8x1xf32>
    %23 = vector.shape_cast %22 : vector<8x1xf32> to vector<8x1xf32>
    %24 = vector.broadcast %23 : vector<8x1xf32> to vector<8x128xf32>
    %25 = arith.select %21, %24, %19 : vector<8x128xi1>, vector<8x128xf32>
    %c2_i32 = arith.constant 2 : i32
    %26 = vector.broadcast %c2_i32 : i32 to vector<8x128xi32>
    %27 = arith.cmpi eq, %6, %26 : vector<8x128xi32>
    %28 = vector.extract_strided_slice %8 {offsets = [0, 2], sizes = [8, 1], strides = [1, 1]} : vector<8x128xf32> to vector<8x1xf32>
    %29 = vector.shape_cast %28 : vector<8x1xf32> to vector<8x1xf32>
    %30 = vector.broadcast %29 : vector<8x1xf32> to vector<8x128xf32>
    %31 = arith.select %27, %30, %25 : vector<8x128xi1>, vector<8x128xf32>
    %c3_i32 = arith.constant 3 : i32
    %32 = vector.broadcast %c3_i32 : i32 to vector<8x128xi32>
    %33 = arith.cmpi eq, %6, %32 : vector<8x128xi32>
    %34 = vector.extract_strided_slice %8 {offsets = [0, 3], sizes = [8, 1], strides = [1, 1]} : vector<8x128xf32> to vector<8x1xf32>
    %35 = vector.shape_cast %34 : vector<8x1xf32> to vector<8x1xf32>
    %36 = vector.broadcast %35 : vector<8x1xf32> to vector<8x128xf32>
    %37 = arith.select %33, %36, %31 : vector<8x128xi1>, vector<8x128xf32>
    %c4_i32 = arith.constant 4 : i32
    %38 = vector.broadcast %c4_i32 : i32 to vector<8x128xi32>
    %39 = arith.cmpi eq, %6, %38 : vector<8x128xi32>
    %40 = vector.extract_strided_slice %8 {offsets = [0, 4], sizes = [8, 1], strides = [1, 1]} : vector<8x128xf32> to vector<8x1xf32>
    %41 = vector.shape_cast %40 : vector<8x1xf32> to vector<8x1xf32>
    %42 = vector.broadcast %41 : vector<8x1xf32> to vector<8x128xf32>
    %43 = arith.select %39, %42, %37 : vector<8x128xi1>, vector<8x128xf32>
    %c5_i32 = arith.constant 5 : i32
    %44 = vector.broadcast %c5_i32 : i32 to vector<8x128xi32>
    %45 = arith.cmpi eq, %6, %44 : vector<8x128xi32>
    %46 = vector.extract_strided_slice %8 {offsets = [0, 5], sizes = [8, 1], strides = [1, 1]} : vector<8x128xf32> to vector<8x1xf32>
    %47 = vector.shape_cast %46 : vector<8x1xf32> to vector<8x1xf32>
    %48 = vector.broadcast %47 : vector<8x1xf32> to vector<8x128xf32>
    %49 = arith.select %45, %48, %43 : vector<8x128xi1>, vector<8x128xf32>
    %c6_i32 = arith.constant 6 : i32
    %50 = vector.broadcast %c6_i32 : i32 to vector<8x128xi32>
    %51 = arith.cmpi eq, %6, %50 : vector<8x128xi32>
    %52 = vector.extract_strided_slice %8 {offsets = [0, 6], sizes = [8, 1], strides = [1, 1]} : vector<8x128xf32> to vector<8x1xf32>
    %53 = vector.shape_cast %52 : vector<8x1xf32> to vector<8x1xf32>
    %54 = vector.broadcast %53 : vector<8x1xf32> to vector<8x128xf32>
    %55 = arith.select %51, %54, %49 : vector<8x128xi1>, vector<8x128xf32>
    %c7_i32 = arith.constant 7 : i32
    %56 = vector.broadcast %c7_i32 : i32 to vector<8x128xi32>
    %57 = arith.cmpi eq, %6, %56 : vector<8x128xi32>
    %58 = vector.extract_strided_slice %8 {offsets = [0, 7], sizes = [8, 1], strides = [1, 1]} : vector<8x128xf32> to vector<8x1xf32>
    %59 = vector.shape_cast %58 : vector<8x1xf32> to vector<8x1xf32>
    %60 = vector.broadcast %59 : vector<8x1xf32> to vector<8x128xf32>
    %61 = arith.select %57, %60, %55 : vector<8x128xi1>, vector<8x128xf32>
    %c8_i32_4 = arith.constant 8 : i32
    %62 = vector.broadcast %c8_i32_4 : i32 to vector<8x128xi32>
    %63 = arith.cmpi eq, %6, %62 : vector<8x128xi32>
    %64 = vector.extract_strided_slice %8 {offsets = [0, 8], sizes = [8, 1], strides = [1, 1]} : vector<8x128xf32> to vector<8x1xf32>
    %65 = vector.shape_cast %64 : vector<8x1xf32> to vector<8x1xf32>
    %66 = vector.broadcast %65 : vector<8x1xf32> to vector<8x128xf32>
    %67 = arith.select %63, %66, %61 : vector<8x128xi1>, vector<8x128xf32>
    %c9_i32 = arith.constant 9 : i32
    %68 = vector.broadcast %c9_i32 : i32 to vector<8x128xi32>
    %69 = arith.cmpi eq, %6, %68 : vector<8x128xi32>
    %70 = vector.extract_strided_slice %8 {offsets = [0, 9], sizes = [8, 1], strides = [1, 1]} : vector<8x128xf32> to vector<8x1xf32>
    %71 = vector.shape_cast %70 : vector<8x1xf32> to vector<8x1xf32>
    %72 = vector.broadcast %71 : vector<8x1xf32> to vector<8x128xf32>
    %73 = arith.select %69, %72, %67 : vector<8x128xi1>, vector<8x128xf32>
    %c10_i32 = arith.constant 10 : i32
    %74 = vector.broadcast %c10_i32 : i32 to vector<8x128xi32>
    %75 = arith.cmpi eq, %6, %74 : vector<8x128xi32>
    %76 = vector.extract_strided_slice %8 {offsets = [0, 10], sizes = [8, 1], strides = [1, 1]} : vector<8x128xf32> to vector<8x1xf32>
    %77 = vector.shape_cast %76 : vector<8x1xf32> to vector<8x1xf32>
    %78 = vector.broadcast %77 : vector<8x1xf32> to vector<8x128xf32>
    %79 = arith.select %75, %78, %73 : vector<8x128xi1>, vector<8x128xf32>
    %c11_i32 = arith.constant 11 : i32
    %80 = vector.broadcast %c11_i32 : i32 to vector<8x128xi32>
    %81 = arith.cmpi eq, %6, %80 : vector<8x128xi32>
    %82 = vector.extract_strided_slice %8 {offsets = [0, 11], sizes = [8, 1], strides = [1, 1]} : vector<8x128xf32> to vector<8x1xf32>
    %83 = vector.shape_cast %82 : vector<8x1xf32> to vector<8x1xf32>
    %84 = vector.broadcast %83 : vector<8x1xf32> to vector<8x128xf32>
    %85 = arith.select %81, %84, %79 : vector<8x128xi1>, vector<8x128xf32>
    %c12_i32 = arith.constant 12 : i32
    %86 = vector.broadcast %c12_i32 : i32 to vector<8x128xi32>
    %87 = arith.cmpi eq, %6, %86 : vector<8x128xi32>
    %88 = vector.extract_strided_slice %8 {offsets = [0, 12], sizes = [8, 1], strides = [1, 1]} : vector<8x128xf32> to vector<8x1xf32>
    %89 = vector.shape_cast %88 : vector<8x1xf32> to vector<8x1xf32>
    %90 = vector.broadcast %89 : vector<8x1xf32> to vector<8x128xf32>
    %91 = arith.select %87, %90, %85 : vector<8x128xi1>, vector<8x128xf32>
    %c13_i32 = arith.constant 13 : i32
    %92 = vector.broadcast %c13_i32 : i32 to vector<8x128xi32>
    %93 = arith.cmpi eq, %6, %92 : vector<8x128xi32>
    %94 = vector.extract_strided_slice %8 {offsets = [0, 13], sizes = [8, 1], strides = [1, 1]} : vector<8x128xf32> to vector<8x1xf32>
    %95 = vector.shape_cast %94 : vector<8x1xf32> to vector<8x1xf32>
    %96 = vector.broadcast %95 : vector<8x1xf32> to vector<8x128xf32>
    %97 = arith.select %93, %96, %91 : vector<8x128xi1>, vector<8x128xf32>
    %c14_i32 = arith.constant 14 : i32
    %98 = vector.broadcast %c14_i32 : i32 to vector<8x128xi32>
    %99 = arith.cmpi eq, %6, %98 : vector<8x128xi32>
    %100 = vector.extract_strided_slice %8 {offsets = [0, 14], sizes = [8, 1], strides = [1, 1]} : vector<8x128xf32> to vector<8x1xf32>
    %101 = vector.shape_cast %100 : vector<8x1xf32> to vector<8x1xf32>
    %102 = vector.broadcast %101 : vector<8x1xf32> to vector<8x128xf32>
    %103 = arith.select %99, %102, %97 : vector<8x128xi1>, vector<8x128xf32>
    %c15_i32 = arith.constant 15 : i32
    %104 = vector.broadcast %c15_i32 : i32 to vector<8x128xi32>
    %105 = arith.cmpi eq, %6, %104 : vector<8x128xi32>
    %106 = vector.extract_strided_slice %8 {offsets = [0, 15], sizes = [8, 1], strides = [1, 1]} : vector<8x128xf32> to vector<8x1xf32>
    %107 = vector.shape_cast %106 : vector<8x1xf32> to vector<8x1xf32>
    %108 = vector.broadcast %107 : vector<8x1xf32> to vector<8x128xf32>
    %109 = arith.select %105, %108, %103 : vector<8x128xi1>, vector<8x128xf32>
    %c16_i32 = arith.constant 16 : i32
    %110 = vector.broadcast %c16_i32 : i32 to vector<8x128xi32>
    %111 = arith.cmpi eq, %6, %110 : vector<8x128xi32>
    %112 = vector.extract_strided_slice %8 {offsets = [0, 16], sizes = [8, 1], strides = [1, 1]} : vector<8x128xf32> to vector<8x1xf32>
    %113 = vector.shape_cast %112 : vector<8x1xf32> to vector<8x1xf32>
    %114 = vector.broadcast %113 : vector<8x1xf32> to vector<8x128xf32>
    %115 = arith.select %111, %114, %109 : vector<8x128xi1>, vector<8x128xf32>
    %c17_i32 = arith.constant 17 : i32
    %116 = vector.broadcast %c17_i32 : i32 to vector<8x128xi32>
    %117 = arith.cmpi eq, %6, %116 : vector<8x128xi32>
    %118 = vector.extract_strided_slice %8 {offsets = [0, 17], sizes = [8, 1], strides = [1, 1]} : vector<8x128xf32> to vector<8x1xf32>
    %119 = vector.shape_cast %118 : vector<8x1xf32> to vector<8x1xf32>
    %120 = vector.broadcast %119 : vector<8x1xf32> to vector<8x128xf32>
    %121 = arith.select %117, %120, %115 : vector<8x128xi1>, vector<8x128xf32>
    %c18_i32 = arith.constant 18 : i32
    %122 = vector.broadcast %c18_i32 : i32 to vector<8x128xi32>
    %123 = arith.cmpi eq, %6, %122 : vector<8x128xi32>
    %124 = vector.extract_strided_slice %8 {offsets = [0, 18], sizes = [8, 1], strides = [1, 1]} : vector<8x128xf32> to vector<8x1xf32>
    %125 = vector.shape_cast %124 : vector<8x1xf32> to vector<8x1xf32>
    %126 = vector.broadcast %125 : vector<8x1xf32> to vector<8x128xf32>
    %127 = arith.select %123, %126, %121 : vector<8x128xi1>, vector<8x128xf32>
    %c19_i32 = arith.constant 19 : i32
    %128 = vector.broadcast %c19_i32 : i32 to vector<8x128xi32>
    %129 = arith.cmpi eq, %6, %128 : vector<8x128xi32>
    %130 = vector.extract_strided_slice %8 {offsets = [0, 19], sizes = [8, 1], strides = [1, 1]} : vector<8x128xf32> to vector<8x1xf32>
    %131 = vector.shape_cast %130 : vector<8x1xf32> to vector<8x1xf32>
    %132 = vector.broadcast %131 : vector<8x1xf32> to vector<8x128xf32>
    %133 = arith.select %129, %132, %127 : vector<8x128xi1>, vector<8x128xf32>
    %c20_i32 = arith.constant 20 : i32
    %134 = vector.broadcast %c20_i32 : i32 to vector<8x128xi32>
    %135 = arith.cmpi eq, %6, %134 : vector<8x128xi32>
    %136 = vector.extract_strided_slice %8 {offsets = [0, 20], sizes = [8, 1], strides = [1, 1]} : vector<8x128xf32> to vector<8x1xf32>
    %137 = vector.shape_cast %136 : vector<8x1xf32> to vector<8x1xf32>
    %138 = vector.broadcast %137 : vector<8x1xf32> to vector<8x128xf32>
    %139 = arith.select %135, %138, %133 : vector<8x128xi1>, vector<8x128xf32>
    %c21_i32 = arith.constant 21 : i32
    %140 = vector.broadcast %c21_i32 : i32 to vector<8x128xi32>
    %141 = arith.cmpi eq, %6, %140 : vector<8x128xi32>
    %142 = vector.extract_strided_slice %8 {offsets = [0, 21], sizes = [8, 1], strides = [1, 1]} : vector<8x128xf32> to vector<8x1xf32>
    %143 = vector.shape_cast %142 : vector<8x1xf32> to vector<8x1xf32>
    %144 = vector.broadcast %143 : vector<8x1xf32> to vector<8x128xf32>
    %145 = arith.select %141, %144, %139 : vector<8x128xi1>, vector<8x128xf32>
    %c22_i32 = arith.constant 22 : i32
    %146 = vector.broadcast %c22_i32 : i32 to vector<8x128xi32>
    %147 = arith.cmpi eq, %6, %146 : vector<8x128xi32>
    %148 = vector.extract_strided_slice %8 {offsets = [0, 22], sizes = [8, 1], strides = [1, 1]} : vector<8x128xf32> to vector<8x1xf32>
    %149 = vector.shape_cast %148 : vector<8x1xf32> to vector<8x1xf32>
    %150 = vector.broadcast %149 : vector<8x1xf32> to vector<8x128xf32>
    %151 = arith.select %147, %150, %145 : vector<8x128xi1>, vector<8x128xf32>
    %c23_i32 = arith.constant 23 : i32
    %152 = vector.broadcast %c23_i32 : i32 to vector<8x128xi32>
    %153 = arith.cmpi eq, %6, %152 : vector<8x128xi32>
    %154 = vector.extract_strided_slice %8 {offsets = [0, 23], sizes = [8, 1], strides = [1, 1]} : vector<8x128xf32> to vector<8x1xf32>
    %155 = vector.shape_cast %154 : vector<8x1xf32> to vector<8x1xf32>
    %156 = vector.broadcast %155 : vector<8x1xf32> to vector<8x128xf32>
    %157 = arith.select %153, %156, %151 : vector<8x128xi1>, vector<8x128xf32>
    %c24_i32 = arith.constant 24 : i32
    %158 = vector.broadcast %c24_i32 : i32 to vector<8x128xi32>
    %159 = arith.cmpi eq, %6, %158 : vector<8x128xi32>
    %160 = vector.extract_strided_slice %8 {offsets = [0, 24], sizes = [8, 1], strides = [1, 1]} : vector<8x128xf32> to vector<8x1xf32>
    %161 = vector.shape_cast %160 : vector<8x1xf32> to vector<8x1xf32>
    %162 = vector.broadcast %161 : vector<8x1xf32> to vector<8x128xf32>
    %163 = arith.select %159, %162, %157 : vector<8x128xi1>, vector<8x128xf32>
    %c25_i32 = arith.constant 25 : i32
    %164 = vector.broadcast %c25_i32 : i32 to vector<8x128xi32>
    %165 = arith.cmpi eq, %6, %164 : vector<8x128xi32>
    %166 = vector.extract_strided_slice %8 {offsets = [0, 25], sizes = [8, 1], strides = [1, 1]} : vector<8x128xf32> to vector<8x1xf32>
    %167 = vector.shape_cast %166 : vector<8x1xf32> to vector<8x1xf32>
    %168 = vector.broadcast %167 : vector<8x1xf32> to vector<8x128xf32>
    %169 = arith.select %165, %168, %163 : vector<8x128xi1>, vector<8x128xf32>
    %c26_i32 = arith.constant 26 : i32
    %170 = vector.broadcast %c26_i32 : i32 to vector<8x128xi32>
    %171 = arith.cmpi eq, %6, %170 : vector<8x128xi32>
    %172 = vector.extract_strided_slice %8 {offsets = [0, 26], sizes = [8, 1], strides = [1, 1]} : vector<8x128xf32> to vector<8x1xf32>
    %173 = vector.shape_cast %172 : vector<8x1xf32> to vector<8x1xf32>
    %174 = vector.broadcast %173 : vector<8x1xf32> to vector<8x128xf32>
    %175 = arith.select %171, %174, %169 : vector<8x128xi1>, vector<8x128xf32>
    %c27_i32 = arith.constant 27 : i32
    %176 = vector.broadcast %c27_i32 : i32 to vector<8x128xi32>
    %177 = arith.cmpi eq, %6, %176 : vector<8x128xi32>
    %178 = vector.extract_strided_slice %8 {offsets = [0, 27], sizes = [8, 1], strides = [1, 1]} : vector<8x128xf32> to vector<8x1xf32>
    %179 = vector.shape_cast %178 : vector<8x1xf32> to vector<8x1xf32>
    %180 = vector.broadcast %179 : vector<8x1xf32> to vector<8x128xf32>
    %181 = arith.select %177, %180, %175 : vector<8x128xi1>, vector<8x128xf32>
    %c28_i32 = arith.constant 28 : i32
    %182 = vector.broadcast %c28_i32 : i32 to vector<8x128xi32>
    %183 = arith.cmpi eq, %6, %182 : vector<8x128xi32>
    %184 = vector.extract_strided_slice %8 {offsets = [0, 28], sizes = [8, 1], strides = [1, 1]} : vector<8x128xf32> to vector<8x1xf32>
    %185 = vector.shape_cast %184 : vector<8x1xf32> to vector<8x1xf32>
    %186 = vector.broadcast %185 : vector<8x1xf32> to vector<8x128xf32>
    %187 = arith.select %183, %186, %181 : vector<8x128xi1>, vector<8x128xf32>
    %c29_i32 = arith.constant 29 : i32
    %188 = vector.broadcast %c29_i32 : i32 to vector<8x128xi32>
    %189 = arith.cmpi eq, %6, %188 : vector<8x128xi32>
    %190 = vector.extract_strided_slice %8 {offsets = [0, 29], sizes = [8, 1], strides = [1, 1]} : vector<8x128xf32> to vector<8x1xf32>
    %191 = vector.shape_cast %190 : vector<8x1xf32> to vector<8x1xf32>
    %192 = vector.broadcast %191 : vector<8x1xf32> to vector<8x128xf32>
    %193 = arith.select %189, %192, %187 : vector<8x128xi1>, vector<8x128xf32>
    %c30_i32 = arith.constant 30 : i32
    %194 = vector.broadcast %c30_i32 : i32 to vector<8x128xi32>
    %195 = arith.cmpi eq, %6, %194 : vector<8x128xi32>
    %196 = vector.extract_strided_slice %8 {offsets = [0, 30], sizes = [8, 1], strides = [1, 1]} : vector<8x128xf32> to vector<8x1xf32>
    %197 = vector.shape_cast %196 : vector<8x1xf32> to vector<8x1xf32>
    %198 = vector.broadcast %197 : vector<8x1xf32> to vector<8x128xf32>
    %199 = arith.select %195, %198, %193 : vector<8x128xi1>, vector<8x128xf32>
    %c31_i32 = arith.constant 31 : i32
    %200 = vector.broadcast %c31_i32 : i32 to vector<8x128xi32>
    %201 = arith.cmpi eq, %6, %200 : vector<8x128xi32>
    %202 = vector.extract_strided_slice %8 {offsets = [0, 31], sizes = [8, 1], strides = [1, 1]} : vector<8x128xf32> to vector<8x1xf32>
    %203 = vector.shape_cast %202 : vector<8x1xf32> to vector<8x1xf32>
    %204 = vector.broadcast %203 : vector<8x1xf32> to vector<8x128xf32>
    %205 = arith.select %201, %204, %199 : vector<8x128xi1>, vector<8x128xf32>
    %c32_i32 = arith.constant 32 : i32
    %206 = vector.broadcast %c32_i32 : i32 to vector<8x128xi32>
    %207 = arith.cmpi eq, %6, %206 : vector<8x128xi32>
    %208 = vector.extract_strided_slice %8 {offsets = [0, 32], sizes = [8, 1], strides = [1, 1]} : vector<8x128xf32> to vector<8x1xf32>
    %209 = vector.shape_cast %208 : vector<8x1xf32> to vector<8x1xf32>
    %210 = vector.broadcast %209 : vector<8x1xf32> to vector<8x128xf32>
    %211 = arith.select %207, %210, %205 : vector<8x128xi1>, vector<8x128xf32>
    %c33_i32 = arith.constant 33 : i32
    %212 = vector.broadcast %c33_i32 : i32 to vector<8x128xi32>
    %213 = arith.cmpi eq, %6, %212 : vector<8x128xi32>
    %214 = vector.extract_strided_slice %8 {offsets = [0, 33], sizes = [8, 1], strides = [1, 1]} : vector<8x128xf32> to vector<8x1xf32>
    %215 = vector.shape_cast %214 : vector<8x1xf32> to vector<8x1xf32>
    %216 = vector.broadcast %215 : vector<8x1xf32> to vector<8x128xf32>
    %217 = arith.select %213, %216, %211 : vector<8x128xi1>, vector<8x128xf32>
    %c34_i32 = arith.constant 34 : i32
    %218 = vector.broadcast %c34_i32 : i32 to vector<8x128xi32>
    %219 = arith.cmpi eq, %6, %218 : vector<8x128xi32>
    %220 = vector.extract_strided_slice %8 {offsets = [0, 34], sizes = [8, 1], strides = [1, 1]} : vector<8x128xf32> to vector<8x1xf32>
    %221 = vector.shape_cast %220 : vector<8x1xf32> to vector<8x1xf32>
    %222 = vector.broadcast %221 : vector<8x1xf32> to vector<8x128xf32>
    %223 = arith.select %219, %222, %217 : vector<8x128xi1>, vector<8x128xf32>
    %c35_i32 = arith.constant 35 : i32
    %224 = vector.broadcast %c35_i32 : i32 to vector<8x128xi32>
    %225 = arith.cmpi eq, %6, %224 : vector<8x128xi32>
    %226 = vector.extract_strided_slice %8 {offsets = [0, 35], sizes = [8, 1], strides = [1, 1]} : vector<8x128xf32> to vector<8x1xf32>
    %227 = vector.shape_cast %226 : vector<8x1xf32> to vector<8x1xf32>
    %228 = vector.broadcast %227 : vector<8x1xf32> to vector<8x128xf32>
    %229 = arith.select %225, %228, %223 : vector<8x128xi1>, vector<8x128xf32>
    %c36_i32 = arith.constant 36 : i32
    %230 = vector.broadcast %c36_i32 : i32 to vector<8x128xi32>
    %231 = arith.cmpi eq, %6, %230 : vector<8x128xi32>
    %232 = vector.extract_strided_slice %8 {offsets = [0, 36], sizes = [8, 1], strides = [1, 1]} : vector<8x128xf32> to vector<8x1xf32>
    %233 = vector.shape_cast %232 : vector<8x1xf32> to vector<8x1xf32>
    %234 = vector.broadcast %233 : vector<8x1xf32> to vector<8x128xf32>
    %235 = arith.select %231, %234, %229 : vector<8x128xi1>, vector<8x128xf32>
    %c37_i32 = arith.constant 37 : i32
    %236 = vector.broadcast %c37_i32 : i32 to vector<8x128xi32>
    %237 = arith.cmpi eq, %6, %236 : vector<8x128xi32>
    %238 = vector.extract_strided_slice %8 {offsets = [0, 37], sizes = [8, 1], strides = [1, 1]} : vector<8x128xf32> to vector<8x1xf32>
    %239 = vector.shape_cast %238 : vector<8x1xf32> to vector<8x1xf32>
    %240 = vector.broadcast %239 : vector<8x1xf32> to vector<8x128xf32>
    %241 = arith.select %237, %240, %235 : vector<8x128xi1>, vector<8x128xf32>
    %c38_i32 = arith.constant 38 : i32
    %242 = vector.broadcast %c38_i32 : i32 to vector<8x128xi32>
    %243 = arith.cmpi eq, %6, %242 : vector<8x128xi32>
    %244 = vector.extract_strided_slice %8 {offsets = [0, 38], sizes = [8, 1], strides = [1, 1]} : vector<8x128xf32> to vector<8x1xf32>
    %245 = vector.shape_cast %244 : vector<8x1xf32> to vector<8x1xf32>
    %246 = vector.broadcast %245 : vector<8x1xf32> to vector<8x128xf32>
    %247 = arith.select %243, %246, %241 : vector<8x128xi1>, vector<8x128xf32>
    %c39_i32 = arith.constant 39 : i32
    %248 = vector.broadcast %c39_i32 : i32 to vector<8x128xi32>
    %249 = arith.cmpi eq, %6, %248 : vector<8x128xi32>
    %250 = vector.extract_strided_slice %8 {offsets = [0, 39], sizes = [8, 1], strides = [1, 1]} : vector<8x128xf32> to vector<8x1xf32>
    %251 = vector.shape_cast %250 : vector<8x1xf32> to vector<8x1xf32>
    %252 = vector.broadcast %251 : vector<8x1xf32> to vector<8x128xf32>
    %253 = arith.select %249, %252, %247 : vector<8x128xi1>, vector<8x128xf32>
    %c40_i32 = arith.constant 40 : i32
    %254 = vector.broadcast %c40_i32 : i32 to vector<8x128xi32>
    %255 = arith.cmpi eq, %6, %254 : vector<8x128xi32>
    %256 = vector.extract_strided_slice %8 {offsets = [0, 40], sizes = [8, 1], strides = [1, 1]} : vector<8x128xf32> to vector<8x1xf32>
    %257 = vector.shape_cast %256 : vector<8x1xf32> to vector<8x1xf32>
    %258 = vector.broadcast %257 : vector<8x1xf32> to vector<8x128xf32>
    %259 = arith.select %255, %258, %253 : vector<8x128xi1>, vector<8x128xf32>
    %c41_i32 = arith.constant 41 : i32
    %260 = vector.broadcast %c41_i32 : i32 to vector<8x128xi32>
    %261 = arith.cmpi eq, %6, %260 : vector<8x128xi32>
    %262 = vector.extract_strided_slice %8 {offsets = [0, 41], sizes = [8, 1], strides = [1, 1]} : vector<8x128xf32> to vector<8x1xf32>
    %263 = vector.shape_cast %262 : vector<8x1xf32> to vector<8x1xf32>
    %264 = vector.broadcast %263 : vector<8x1xf32> to vector<8x128xf32>
    %265 = arith.select %261, %264, %259 : vector<8x128xi1>, vector<8x128xf32>
    %c42_i32 = arith.constant 42 : i32
    %266 = vector.broadcast %c42_i32 : i32 to vector<8x128xi32>
    %267 = arith.cmpi eq, %6, %266 : vector<8x128xi32>
    %268 = vector.extract_strided_slice %8 {offsets = [0, 42], sizes = [8, 1], strides = [1, 1]} : vector<8x128xf32> to vector<8x1xf32>
    %269 = vector.shape_cast %268 : vector<8x1xf32> to vector<8x1xf32>
    %270 = vector.broadcast %269 : vector<8x1xf32> to vector<8x128xf32>
    %271 = arith.select %267, %270, %265 : vector<8x128xi1>, vector<8x128xf32>
    %c43_i32 = arith.constant 43 : i32
    %272 = vector.broadcast %c43_i32 : i32 to vector<8x128xi32>
    %273 = arith.cmpi eq, %6, %272 : vector<8x128xi32>
    %274 = vector.extract_strided_slice %8 {offsets = [0, 43], sizes = [8, 1], strides = [1, 1]} : vector<8x128xf32> to vector<8x1xf32>
    %275 = vector.shape_cast %274 : vector<8x1xf32> to vector<8x1xf32>
    %276 = vector.broadcast %275 : vector<8x1xf32> to vector<8x128xf32>
    %277 = arith.select %273, %276, %271 : vector<8x128xi1>, vector<8x128xf32>
    %c44_i32 = arith.constant 44 : i32
    %278 = vector.broadcast %c44_i32 : i32 to vector<8x128xi32>
    %279 = arith.cmpi eq, %6, %278 : vector<8x128xi32>
    %280 = vector.extract_strided_slice %8 {offsets = [0, 44], sizes = [8, 1], strides = [1, 1]} : vector<8x128xf32> to vector<8x1xf32>
    %281 = vector.shape_cast %280 : vector<8x1xf32> to vector<8x1xf32>
    %282 = vector.broadcast %281 : vector<8x1xf32> to vector<8x128xf32>
    %283 = arith.select %279, %282, %277 : vector<8x128xi1>, vector<8x128xf32>
    %c45_i32 = arith.constant 45 : i32
    %284 = vector.broadcast %c45_i32 : i32 to vector<8x128xi32>
    %285 = arith.cmpi eq, %6, %284 : vector<8x128xi32>
    %286 = vector.extract_strided_slice %8 {offsets = [0, 45], sizes = [8, 1], strides = [1, 1]} : vector<8x128xf32> to vector<8x1xf32>
    %287 = vector.shape_cast %286 : vector<8x1xf32> to vector<8x1xf32>
    %288 = vector.broadcast %287 : vector<8x1xf32> to vector<8x128xf32>
    %289 = arith.select %285, %288, %283 : vector<8x128xi1>, vector<8x128xf32>
    %c46_i32 = arith.constant 46 : i32
    %290 = vector.broadcast %c46_i32 : i32 to vector<8x128xi32>
    %291 = arith.cmpi eq, %6, %290 : vector<8x128xi32>
    %292 = vector.extract_strided_slice %8 {offsets = [0, 46], sizes = [8, 1], strides = [1, 1]} : vector<8x128xf32> to vector<8x1xf32>
    %293 = vector.shape_cast %292 : vector<8x1xf32> to vector<8x1xf32>
    %294 = vector.broadcast %293 : vector<8x1xf32> to vector<8x128xf32>
    %295 = arith.select %291, %294, %289 : vector<8x128xi1>, vector<8x128xf32>
    %c47_i32 = arith.constant 47 : i32
    %296 = vector.broadcast %c47_i32 : i32 to vector<8x128xi32>
    %297 = arith.cmpi eq, %6, %296 : vector<8x128xi32>
    %298 = vector.extract_strided_slice %8 {offsets = [0, 47], sizes = [8, 1], strides = [1, 1]} : vector<8x128xf32> to vector<8x1xf32>
    %299 = vector.shape_cast %298 : vector<8x1xf32> to vector<8x1xf32>
    %300 = vector.broadcast %299 : vector<8x1xf32> to vector<8x128xf32>
    %301 = arith.select %297, %300, %295 : vector<8x128xi1>, vector<8x128xf32>
    %c48_i32 = arith.constant 48 : i32
    %302 = vector.broadcast %c48_i32 : i32 to vector<8x128xi32>
    %303 = arith.cmpi eq, %6, %302 : vector<8x128xi32>
    %304 = vector.extract_strided_slice %8 {offsets = [0, 48], sizes = [8, 1], strides = [1, 1]} : vector<8x128xf32> to vector<8x1xf32>
    %305 = vector.shape_cast %304 : vector<8x1xf32> to vector<8x1xf32>
    %306 = vector.broadcast %305 : vector<8x1xf32> to vector<8x128xf32>
    %307 = arith.select %303, %306, %301 : vector<8x128xi1>, vector<8x128xf32>
    %c49_i32 = arith.constant 49 : i32
    %308 = vector.broadcast %c49_i32 : i32 to vector<8x128xi32>
    %309 = arith.cmpi eq, %6, %308 : vector<8x128xi32>
    %310 = vector.extract_strided_slice %8 {offsets = [0, 49], sizes = [8, 1], strides = [1, 1]} : vector<8x128xf32> to vector<8x1xf32>
    %311 = vector.shape_cast %310 : vector<8x1xf32> to vector<8x1xf32>
    %312 = vector.broadcast %311 : vector<8x1xf32> to vector<8x128xf32>
    %313 = arith.select %309, %312, %307 : vector<8x128xi1>, vector<8x128xf32>
    %c50_i32 = arith.constant 50 : i32
    %314 = vector.broadcast %c50_i32 : i32 to vector<8x128xi32>
    %315 = arith.cmpi eq, %6, %314 : vector<8x128xi32>
    %316 = vector.extract_strided_slice %8 {offsets = [0, 50], sizes = [8, 1], strides = [1, 1]} : vector<8x128xf32> to vector<8x1xf32>
    %317 = vector.shape_cast %316 : vector<8x1xf32> to vector<8x1xf32>
    %318 = vector.broadcast %317 : vector<8x1xf32> to vector<8x128xf32>
    %319 = arith.select %315, %318, %313 : vector<8x128xi1>, vector<8x128xf32>
    %c51_i32 = arith.constant 51 : i32
    %320 = vector.broadcast %c51_i32 : i32 to vector<8x128xi32>
    %321 = arith.cmpi eq, %6, %320 : vector<8x128xi32>
    %322 = vector.extract_strided_slice %8 {offsets = [0, 51], sizes = [8, 1], strides = [1, 1]} : vector<8x128xf32> to vector<8x1xf32>
    %323 = vector.shape_cast %322 : vector<8x1xf32> to vector<8x1xf32>
    %324 = vector.broadcast %323 : vector<8x1xf32> to vector<8x128xf32>
    %325 = arith.select %321, %324, %319 : vector<8x128xi1>, vector<8x128xf32>
    %c52_i32 = arith.constant 52 : i32
    %326 = vector.broadcast %c52_i32 : i32 to vector<8x128xi32>
    %327 = arith.cmpi eq, %6, %326 : vector<8x128xi32>
    %328 = vector.extract_strided_slice %8 {offsets = [0, 52], sizes = [8, 1], strides = [1, 1]} : vector<8x128xf32> to vector<8x1xf32>
    %329 = vector.shape_cast %328 : vector<8x1xf32> to vector<8x1xf32>
    %330 = vector.broadcast %329 : vector<8x1xf32> to vector<8x128xf32>
    %331 = arith.select %327, %330, %325 : vector<8x128xi1>, vector<8x128xf32>
    %c53_i32 = arith.constant 53 : i32
    %332 = vector.broadcast %c53_i32 : i32 to vector<8x128xi32>
    %333 = arith.cmpi eq, %6, %332 : vector<8x128xi32>
    %334 = vector.extract_strided_slice %8 {offsets = [0, 53], sizes = [8, 1], strides = [1, 1]} : vector<8x128xf32> to vector<8x1xf32>
    %335 = vector.shape_cast %334 : vector<8x1xf32> to vector<8x1xf32>
    %336 = vector.broadcast %335 : vector<8x1xf32> to vector<8x128xf32>
    %337 = arith.select %333, %336, %331 : vector<8x128xi1>, vector<8x128xf32>
    %c54_i32 = arith.constant 54 : i32
    %338 = vector.broadcast %c54_i32 : i32 to vector<8x128xi32>
    %339 = arith.cmpi eq, %6, %338 : vector<8x128xi32>
    %340 = vector.extract_strided_slice %8 {offsets = [0, 54], sizes = [8, 1], strides = [1, 1]} : vector<8x128xf32> to vector<8x1xf32>
    %341 = vector.shape_cast %340 : vector<8x1xf32> to vector<8x1xf32>
    %342 = vector.broadcast %341 : vector<8x1xf32> to vector<8x128xf32>
    %343 = arith.select %339, %342, %337 : vector<8x128xi1>, vector<8x128xf32>
    %c55_i32 = arith.constant 55 : i32
    %344 = vector.broadcast %c55_i32 : i32 to vector<8x128xi32>
    %345 = arith.cmpi eq, %6, %344 : vector<8x128xi32>
    %346 = vector.extract_strided_slice %8 {offsets = [0, 55], sizes = [8, 1], strides = [1, 1]} : vector<8x128xf32> to vector<8x1xf32>
    %347 = vector.shape_cast %346 : vector<8x1xf32> to vector<8x1xf32>
    %348 = vector.broadcast %347 : vector<8x1xf32> to vector<8x128xf32>
    %349 = arith.select %345, %348, %343 : vector<8x128xi1>, vector<8x128xf32>
    %c56_i32 = arith.constant 56 : i32
    %350 = vector.broadcast %c56_i32 : i32 to vector<8x128xi32>
    %351 = arith.cmpi eq, %6, %350 : vector<8x128xi32>
    %352 = vector.extract_strided_slice %8 {offsets = [0, 56], sizes = [8, 1], strides = [1, 1]} : vector<8x128xf32> to vector<8x1xf32>
    %353 = vector.shape_cast %352 : vector<8x1xf32> to vector<8x1xf32>
    %354 = vector.broadcast %353 : vector<8x1xf32> to vector<8x128xf32>
    %355 = arith.select %351, %354, %349 : vector<8x128xi1>, vector<8x128xf32>
    %c57_i32 = arith.constant 57 : i32
    %356 = vector.broadcast %c57_i32 : i32 to vector<8x128xi32>
    %357 = arith.cmpi eq, %6, %356 : vector<8x128xi32>
    %358 = vector.extract_strided_slice %8 {offsets = [0, 57], sizes = [8, 1], strides = [1, 1]} : vector<8x128xf32> to vector<8x1xf32>
    %359 = vector.shape_cast %358 : vector<8x1xf32> to vector<8x1xf32>
    %360 = vector.broadcast %359 : vector<8x1xf32> to vector<8x128xf32>
    %361 = arith.select %357, %360, %355 : vector<8x128xi1>, vector<8x128xf32>
    %c58_i32 = arith.constant 58 : i32
    %362 = vector.broadcast %c58_i32 : i32 to vector<8x128xi32>
    %363 = arith.cmpi eq, %6, %362 : vector<8x128xi32>
    %364 = vector.extract_strided_slice %8 {offsets = [0, 58], sizes = [8, 1], strides = [1, 1]} : vector<8x128xf32> to vector<8x1xf32>
    %365 = vector.shape_cast %364 : vector<8x1xf32> to vector<8x1xf32>
    %366 = vector.broadcast %365 : vector<8x1xf32> to vector<8x128xf32>
    %367 = arith.select %363, %366, %361 : vector<8x128xi1>, vector<8x128xf32>
    %c59_i32 = arith.constant 59 : i32
    %368 = vector.broadcast %c59_i32 : i32 to vector<8x128xi32>
    %369 = arith.cmpi eq, %6, %368 : vector<8x128xi32>
    %370 = vector.extract_strided_slice %8 {offsets = [0, 59], sizes = [8, 1], strides = [1, 1]} : vector<8x128xf32> to vector<8x1xf32>
    %371 = vector.shape_cast %370 : vector<8x1xf32> to vector<8x1xf32>
    %372 = vector.broadcast %371 : vector<8x1xf32> to vector<8x128xf32>
    %373 = arith.select %369, %372, %367 : vector<8x128xi1>, vector<8x128xf32>
    %c60_i32 = arith.constant 60 : i32
    %374 = vector.broadcast %c60_i32 : i32 to vector<8x128xi32>
    %375 = arith.cmpi eq, %6, %374 : vector<8x128xi32>
    %376 = vector.extract_strided_slice %8 {offsets = [0, 60], sizes = [8, 1], strides = [1, 1]} : vector<8x128xf32> to vector<8x1xf32>
    %377 = vector.shape_cast %376 : vector<8x1xf32> to vector<8x1xf32>
    %378 = vector.broadcast %377 : vector<8x1xf32> to vector<8x128xf32>
    %379 = arith.select %375, %378, %373 : vector<8x128xi1>, vector<8x128xf32>
    %c61_i32 = arith.constant 61 : i32
    %380 = vector.broadcast %c61_i32 : i32 to vector<8x128xi32>
    %381 = arith.cmpi eq, %6, %380 : vector<8x128xi32>
    %382 = vector.extract_strided_slice %8 {offsets = [0, 61], sizes = [8, 1], strides = [1, 1]} : vector<8x128xf32> to vector<8x1xf32>
    %383 = vector.shape_cast %382 : vector<8x1xf32> to vector<8x1xf32>
    %384 = vector.broadcast %383 : vector<8x1xf32> to vector<8x128xf32>
    %385 = arith.select %381, %384, %379 : vector<8x128xi1>, vector<8x128xf32>
    %c62_i32 = arith.constant 62 : i32
    %386 = vector.broadcast %c62_i32 : i32 to vector<8x128xi32>
    %387 = arith.cmpi eq, %6, %386 : vector<8x128xi32>
    %388 = vector.extract_strided_slice %8 {offsets = [0, 62], sizes = [8, 1], strides = [1, 1]} : vector<8x128xf32> to vector<8x1xf32>
    %389 = vector.shape_cast %388 : vector<8x1xf32> to vector<8x1xf32>
    %390 = vector.broadcast %389 : vector<8x1xf32> to vector<8x128xf32>
    %391 = arith.select %387, %390, %385 : vector<8x128xi1>, vector<8x128xf32>
    %c63_i32 = arith.constant 63 : i32
    %392 = vector.broadcast %c63_i32 : i32 to vector<8x128xi32>
    %393 = arith.cmpi eq, %6, %392 : vector<8x128xi32>
    %394 = vector.extract_strided_slice %8 {offsets = [0, 63], sizes = [8, 1], strides = [1, 1]} : vector<8x128xf32> to vector<8x1xf32>
    %395 = vector.shape_cast %394 : vector<8x1xf32> to vector<8x1xf32>
    %396 = vector.broadcast %395 : vector<8x1xf32> to vector<8x128xf32>
    %397 = arith.select %393, %396, %391 : vector<8x128xi1>, vector<8x128xf32>
    %c64_i32 = arith.constant 64 : i32
    %398 = vector.broadcast %c64_i32 : i32 to vector<8x128xi32>
    %399 = arith.cmpi eq, %6, %398 : vector<8x128xi32>
    %400 = vector.extract_strided_slice %8 {offsets = [0, 64], sizes = [8, 1], strides = [1, 1]} : vector<8x128xf32> to vector<8x1xf32>
    %401 = vector.shape_cast %400 : vector<8x1xf32> to vector<8x1xf32>
    %402 = vector.broadcast %401 : vector<8x1xf32> to vector<8x128xf32>
    %403 = arith.select %399, %402, %397 : vector<8x128xi1>, vector<8x128xf32>
    %c65_i32 = arith.constant 65 : i32
    %404 = vector.broadcast %c65_i32 : i32 to vector<8x128xi32>
    %405 = arith.cmpi eq, %6, %404 : vector<8x128xi32>
    %406 = vector.extract_strided_slice %8 {offsets = [0, 65], sizes = [8, 1], strides = [1, 1]} : vector<8x128xf32> to vector<8x1xf32>
    %407 = vector.shape_cast %406 : vector<8x1xf32> to vector<8x1xf32>
    %408 = vector.broadcast %407 : vector<8x1xf32> to vector<8x128xf32>
    %409 = arith.select %405, %408, %403 : vector<8x128xi1>, vector<8x128xf32>
    %c66_i32 = arith.constant 66 : i32
    %410 = vector.broadcast %c66_i32 : i32 to vector<8x128xi32>
    %411 = arith.cmpi eq, %6, %410 : vector<8x128xi32>
    %412 = vector.extract_strided_slice %8 {offsets = [0, 66], sizes = [8, 1], strides = [1, 1]} : vector<8x128xf32> to vector<8x1xf32>
    %413 = vector.shape_cast %412 : vector<8x1xf32> to vector<8x1xf32>
    %414 = vector.broadcast %413 : vector<8x1xf32> to vector<8x128xf32>
    %415 = arith.select %411, %414, %409 : vector<8x128xi1>, vector<8x128xf32>
    %c67_i32 = arith.constant 67 : i32
    %416 = vector.broadcast %c67_i32 : i32 to vector<8x128xi32>
    %417 = arith.cmpi eq, %6, %416 : vector<8x128xi32>
    %418 = vector.extract_strided_slice %8 {offsets = [0, 67], sizes = [8, 1], strides = [1, 1]} : vector<8x128xf32> to vector<8x1xf32>
    %419 = vector.shape_cast %418 : vector<8x1xf32> to vector<8x1xf32>
    %420 = vector.broadcast %419 : vector<8x1xf32> to vector<8x128xf32>
    %421 = arith.select %417, %420, %415 : vector<8x128xi1>, vector<8x128xf32>
    %c68_i32 = arith.constant 68 : i32
    %422 = vector.broadcast %c68_i32 : i32 to vector<8x128xi32>
    %423 = arith.cmpi eq, %6, %422 : vector<8x128xi32>
    %424 = vector.extract_strided_slice %8 {offsets = [0, 68], sizes = [8, 1], strides = [1, 1]} : vector<8x128xf32> to vector<8x1xf32>
    %425 = vector.shape_cast %424 : vector<8x1xf32> to vector<8x1xf32>
    %426 = vector.broadcast %425 : vector<8x1xf32> to vector<8x128xf32>
    %427 = arith.select %423, %426, %421 : vector<8x128xi1>, vector<8x128xf32>
    %c69_i32 = arith.constant 69 : i32
    %428 = vector.broadcast %c69_i32 : i32 to vector<8x128xi32>
    %429 = arith.cmpi eq, %6, %428 : vector<8x128xi32>
    %430 = vector.extract_strided_slice %8 {offsets = [0, 69], sizes = [8, 1], strides = [1, 1]} : vector<8x128xf32> to vector<8x1xf32>
    %431 = vector.shape_cast %430 : vector<8x1xf32> to vector<8x1xf32>
    %432 = vector.broadcast %431 : vector<8x1xf32> to vector<8x128xf32>
    %433 = arith.select %429, %432, %427 : vector<8x128xi1>, vector<8x128xf32>
    %c70_i32 = arith.constant 70 : i32
    %434 = vector.broadcast %c70_i32 : i32 to vector<8x128xi32>
    %435 = arith.cmpi eq, %6, %434 : vector<8x128xi32>
    %436 = vector.extract_strided_slice %8 {offsets = [0, 70], sizes = [8, 1], strides = [1, 1]} : vector<8x128xf32> to vector<8x1xf32>
    %437 = vector.shape_cast %436 : vector<8x1xf32> to vector<8x1xf32>
    %438 = vector.broadcast %437 : vector<8x1xf32> to vector<8x128xf32>
    %439 = arith.select %435, %438, %433 : vector<8x128xi1>, vector<8x128xf32>
    %c71_i32 = arith.constant 71 : i32
    %440 = vector.broadcast %c71_i32 : i32 to vector<8x128xi32>
    %441 = arith.cmpi eq, %6, %440 : vector<8x128xi32>
    %442 = vector.extract_strided_slice %8 {offsets = [0, 71], sizes = [8, 1], strides = [1, 1]} : vector<8x128xf32> to vector<8x1xf32>
    %443 = vector.shape_cast %442 : vector<8x1xf32> to vector<8x1xf32>
    %444 = vector.broadcast %443 : vector<8x1xf32> to vector<8x128xf32>
    %445 = arith.select %441, %444, %439 : vector<8x128xi1>, vector<8x128xf32>
    %c72_i32 = arith.constant 72 : i32
    %446 = vector.broadcast %c72_i32 : i32 to vector<8x128xi32>
    %447 = arith.cmpi eq, %6, %446 : vector<8x128xi32>
    %448 = vector.extract_strided_slice %8 {offsets = [0, 72], sizes = [8, 1], strides = [1, 1]} : vector<8x128xf32> to vector<8x1xf32>
    %449 = vector.shape_cast %448 : vector<8x1xf32> to vector<8x1xf32>
    %450 = vector.broadcast %449 : vector<8x1xf32> to vector<8x128xf32>
    %451 = arith.select %447, %450, %445 : vector<8x128xi1>, vector<8x128xf32>
    %c73_i32 = arith.constant 73 : i32
    %452 = vector.broadcast %c73_i32 : i32 to vector<8x128xi32>
    %453 = arith.cmpi eq, %6, %452 : vector<8x128xi32>
    %454 = vector.extract_strided_slice %8 {offsets = [0, 73], sizes = [8, 1], strides = [1, 1]} : vector<8x128xf32> to vector<8x1xf32>
    %455 = vector.shape_cast %454 : vector<8x1xf32> to vector<8x1xf32>
    %456 = vector.broadcast %455 : vector<8x1xf32> to vector<8x128xf32>
    %457 = arith.select %453, %456, %451 : vector<8x128xi1>, vector<8x128xf32>
    %c74_i32 = arith.constant 74 : i32
    %458 = vector.broadcast %c74_i32 : i32 to vector<8x128xi32>
    %459 = arith.cmpi eq, %6, %458 : vector<8x128xi32>
    %460 = vector.extract_strided_slice %8 {offsets = [0, 74], sizes = [8, 1], strides = [1, 1]} : vector<8x128xf32> to vector<8x1xf32>
    %461 = vector.shape_cast %460 : vector<8x1xf32> to vector<8x1xf32>
    %462 = vector.broadcast %461 : vector<8x1xf32> to vector<8x128xf32>
    %463 = arith.select %459, %462, %457 : vector<8x128xi1>, vector<8x128xf32>
    %c75_i32 = arith.constant 75 : i32
    %464 = vector.broadcast %c75_i32 : i32 to vector<8x128xi32>
    %465 = arith.cmpi eq, %6, %464 : vector<8x128xi32>
    %466 = vector.extract_strided_slice %8 {offsets = [0, 75], sizes = [8, 1], strides = [1, 1]} : vector<8x128xf32> to vector<8x1xf32>
    %467 = vector.shape_cast %466 : vector<8x1xf32> to vector<8x1xf32>
    %468 = vector.broadcast %467 : vector<8x1xf32> to vector<8x128xf32>
    %469 = arith.select %465, %468, %463 : vector<8x128xi1>, vector<8x128xf32>
    %c76_i32 = arith.constant 76 : i32
    %470 = vector.broadcast %c76_i32 : i32 to vector<8x128xi32>
    %471 = arith.cmpi eq, %6, %470 : vector<8x128xi32>
    %472 = vector.extract_strided_slice %8 {offsets = [0, 76], sizes = [8, 1], strides = [1, 1]} : vector<8x128xf32> to vector<8x1xf32>
    %473 = vector.shape_cast %472 : vector<8x1xf32> to vector<8x1xf32>
    %474 = vector.broadcast %473 : vector<8x1xf32> to vector<8x128xf32>
    %475 = arith.select %471, %474, %469 : vector<8x128xi1>, vector<8x128xf32>
    %c77_i32 = arith.constant 77 : i32
    %476 = vector.broadcast %c77_i32 : i32 to vector<8x128xi32>
    %477 = arith.cmpi eq, %6, %476 : vector<8x128xi32>
    %478 = vector.extract_strided_slice %8 {offsets = [0, 77], sizes = [8, 1], strides = [1, 1]} : vector<8x128xf32> to vector<8x1xf32>
    %479 = vector.shape_cast %478 : vector<8x1xf32> to vector<8x1xf32>
    %480 = vector.broadcast %479 : vector<8x1xf32> to vector<8x128xf32>
    %481 = arith.select %477, %480, %475 : vector<8x128xi1>, vector<8x128xf32>
    %c78_i32 = arith.constant 78 : i32
    %482 = vector.broadcast %c78_i32 : i32 to vector<8x128xi32>
    %483 = arith.cmpi eq, %6, %482 : vector<8x128xi32>
    %484 = vector.extract_strided_slice %8 {offsets = [0, 78], sizes = [8, 1], strides = [1, 1]} : vector<8x128xf32> to vector<8x1xf32>
    %485 = vector.shape_cast %484 : vector<8x1xf32> to vector<8x1xf32>
    %486 = vector.broadcast %485 : vector<8x1xf32> to vector<8x128xf32>
    %487 = arith.select %483, %486, %481 : vector<8x128xi1>, vector<8x128xf32>
    %c79_i32 = arith.constant 79 : i32
    %488 = vector.broadcast %c79_i32 : i32 to vector<8x128xi32>
    %489 = arith.cmpi eq, %6, %488 : vector<8x128xi32>
    %490 = vector.extract_strided_slice %8 {offsets = [0, 79], sizes = [8, 1], strides = [1, 1]} : vector<8x128xf32> to vector<8x1xf32>
    %491 = vector.shape_cast %490 : vector<8x1xf32> to vector<8x1xf32>
    %492 = vector.broadcast %491 : vector<8x1xf32> to vector<8x128xf32>
    %493 = arith.select %489, %492, %487 : vector<8x128xi1>, vector<8x128xf32>
    %c80_i32 = arith.constant 80 : i32
    %494 = vector.broadcast %c80_i32 : i32 to vector<8x128xi32>
    %495 = arith.cmpi eq, %6, %494 : vector<8x128xi32>
    %496 = vector.extract_strided_slice %8 {offsets = [0, 80], sizes = [8, 1], strides = [1, 1]} : vector<8x128xf32> to vector<8x1xf32>
    %497 = vector.shape_cast %496 : vector<8x1xf32> to vector<8x1xf32>
    %498 = vector.broadcast %497 : vector<8x1xf32> to vector<8x128xf32>
    %499 = arith.select %495, %498, %493 : vector<8x128xi1>, vector<8x128xf32>
    %c81_i32 = arith.constant 81 : i32
    %500 = vector.broadcast %c81_i32 : i32 to vector<8x128xi32>
    %501 = arith.cmpi eq, %6, %500 : vector<8x128xi32>
    %502 = vector.extract_strided_slice %8 {offsets = [0, 81], sizes = [8, 1], strides = [1, 1]} : vector<8x128xf32> to vector<8x1xf32>
    %503 = vector.shape_cast %502 : vector<8x1xf32> to vector<8x1xf32>
    %504 = vector.broadcast %503 : vector<8x1xf32> to vector<8x128xf32>
    %505 = arith.select %501, %504, %499 : vector<8x128xi1>, vector<8x128xf32>
    %c82_i32 = arith.constant 82 : i32
    %506 = vector.broadcast %c82_i32 : i32 to vector<8x128xi32>
    %507 = arith.cmpi eq, %6, %506 : vector<8x128xi32>
    %508 = vector.extract_strided_slice %8 {offsets = [0, 82], sizes = [8, 1], strides = [1, 1]} : vector<8x128xf32> to vector<8x1xf32>
    %509 = vector.shape_cast %508 : vector<8x1xf32> to vector<8x1xf32>
    %510 = vector.broadcast %509 : vector<8x1xf32> to vector<8x128xf32>
    %511 = arith.select %507, %510, %505 : vector<8x128xi1>, vector<8x128xf32>
    %c83_i32 = arith.constant 83 : i32
    %512 = vector.broadcast %c83_i32 : i32 to vector<8x128xi32>
    %513 = arith.cmpi eq, %6, %512 : vector<8x128xi32>
    %514 = vector.extract_strided_slice %8 {offsets = [0, 83], sizes = [8, 1], strides = [1, 1]} : vector<8x128xf32> to vector<8x1xf32>
    %515 = vector.shape_cast %514 : vector<8x1xf32> to vector<8x1xf32>
    %516 = vector.broadcast %515 : vector<8x1xf32> to vector<8x128xf32>
    %517 = arith.select %513, %516, %511 : vector<8x128xi1>, vector<8x128xf32>
    %c84_i32 = arith.constant 84 : i32
    %518 = vector.broadcast %c84_i32 : i32 to vector<8x128xi32>
    %519 = arith.cmpi eq, %6, %518 : vector<8x128xi32>
    %520 = vector.extract_strided_slice %8 {offsets = [0, 84], sizes = [8, 1], strides = [1, 1]} : vector<8x128xf32> to vector<8x1xf32>
    %521 = vector.shape_cast %520 : vector<8x1xf32> to vector<8x1xf32>
    %522 = vector.broadcast %521 : vector<8x1xf32> to vector<8x128xf32>
    %523 = arith.select %519, %522, %517 : vector<8x128xi1>, vector<8x128xf32>
    %c85_i32 = arith.constant 85 : i32
    %524 = vector.broadcast %c85_i32 : i32 to vector<8x128xi32>
    %525 = arith.cmpi eq, %6, %524 : vector<8x128xi32>
    %526 = vector.extract_strided_slice %8 {offsets = [0, 85], sizes = [8, 1], strides = [1, 1]} : vector<8x128xf32> to vector<8x1xf32>
    %527 = vector.shape_cast %526 : vector<8x1xf32> to vector<8x1xf32>
    %528 = vector.broadcast %527 : vector<8x1xf32> to vector<8x128xf32>
    %529 = arith.select %525, %528, %523 : vector<8x128xi1>, vector<8x128xf32>
    %c86_i32 = arith.constant 86 : i32
    %530 = vector.broadcast %c86_i32 : i32 to vector<8x128xi32>
    %531 = arith.cmpi eq, %6, %530 : vector<8x128xi32>
    %532 = vector.extract_strided_slice %8 {offsets = [0, 86], sizes = [8, 1], strides = [1, 1]} : vector<8x128xf32> to vector<8x1xf32>
    %533 = vector.shape_cast %532 : vector<8x1xf32> to vector<8x1xf32>
    %534 = vector.broadcast %533 : vector<8x1xf32> to vector<8x128xf32>
    %535 = arith.select %531, %534, %529 : vector<8x128xi1>, vector<8x128xf32>
    %c87_i32 = arith.constant 87 : i32
    %536 = vector.broadcast %c87_i32 : i32 to vector<8x128xi32>
    %537 = arith.cmpi eq, %6, %536 : vector<8x128xi32>
    %538 = vector.extract_strided_slice %8 {offsets = [0, 87], sizes = [8, 1], strides = [1, 1]} : vector<8x128xf32> to vector<8x1xf32>
    %539 = vector.shape_cast %538 : vector<8x1xf32> to vector<8x1xf32>
    %540 = vector.broadcast %539 : vector<8x1xf32> to vector<8x128xf32>
    %541 = arith.select %537, %540, %535 : vector<8x128xi1>, vector<8x128xf32>
    %c88_i32 = arith.constant 88 : i32
    %542 = vector.broadcast %c88_i32 : i32 to vector<8x128xi32>
    %543 = arith.cmpi eq, %6, %542 : vector<8x128xi32>
    %544 = vector.extract_strided_slice %8 {offsets = [0, 88], sizes = [8, 1], strides = [1, 1]} : vector<8x128xf32> to vector<8x1xf32>
    %545 = vector.shape_cast %544 : vector<8x1xf32> to vector<8x1xf32>
    %546 = vector.broadcast %545 : vector<8x1xf32> to vector<8x128xf32>
    %547 = arith.select %543, %546, %541 : vector<8x128xi1>, vector<8x128xf32>
    %c89_i32 = arith.constant 89 : i32
    %548 = vector.broadcast %c89_i32 : i32 to vector<8x128xi32>
    %549 = arith.cmpi eq, %6, %548 : vector<8x128xi32>
    %550 = vector.extract_strided_slice %8 {offsets = [0, 89], sizes = [8, 1], strides = [1, 1]} : vector<8x128xf32> to vector<8x1xf32>
    %551 = vector.shape_cast %550 : vector<8x1xf32> to vector<8x1xf32>
    %552 = vector.broadcast %551 : vector<8x1xf32> to vector<8x128xf32>
    %553 = arith.select %549, %552, %547 : vector<8x128xi1>, vector<8x128xf32>
    %c90_i32 = arith.constant 90 : i32
    %554 = vector.broadcast %c90_i32 : i32 to vector<8x128xi32>
    %555 = arith.cmpi eq, %6, %554 : vector<8x128xi32>
    %556 = vector.extract_strided_slice %8 {offsets = [0, 90], sizes = [8, 1], strides = [1, 1]} : vector<8x128xf32> to vector<8x1xf32>
    %557 = vector.shape_cast %556 : vector<8x1xf32> to vector<8x1xf32>
    %558 = vector.broadcast %557 : vector<8x1xf32> to vector<8x128xf32>
    %559 = arith.select %555, %558, %553 : vector<8x128xi1>, vector<8x128xf32>
    %c91_i32 = arith.constant 91 : i32
    %560 = vector.broadcast %c91_i32 : i32 to vector<8x128xi32>
    %561 = arith.cmpi eq, %6, %560 : vector<8x128xi32>
    %562 = vector.extract_strided_slice %8 {offsets = [0, 91], sizes = [8, 1], strides = [1, 1]} : vector<8x128xf32> to vector<8x1xf32>
    %563 = vector.shape_cast %562 : vector<8x1xf32> to vector<8x1xf32>
    %564 = vector.broadcast %563 : vector<8x1xf32> to vector<8x128xf32>
    %565 = arith.select %561, %564, %559 : vector<8x128xi1>, vector<8x128xf32>
    %c92_i32 = arith.constant 92 : i32
    %566 = vector.broadcast %c92_i32 : i32 to vector<8x128xi32>
    %567 = arith.cmpi eq, %6, %566 : vector<8x128xi32>
    %568 = vector.extract_strided_slice %8 {offsets = [0, 92], sizes = [8, 1], strides = [1, 1]} : vector<8x128xf32> to vector<8x1xf32>
    %569 = vector.shape_cast %568 : vector<8x1xf32> to vector<8x1xf32>
    %570 = vector.broadcast %569 : vector<8x1xf32> to vector<8x128xf32>
    %571 = arith.select %567, %570, %565 : vector<8x128xi1>, vector<8x128xf32>
    %c93_i32 = arith.constant 93 : i32
    %572 = vector.broadcast %c93_i32 : i32 to vector<8x128xi32>
    %573 = arith.cmpi eq, %6, %572 : vector<8x128xi32>
    %574 = vector.extract_strided_slice %8 {offsets = [0, 93], sizes = [8, 1], strides = [1, 1]} : vector<8x128xf32> to vector<8x1xf32>
    %575 = vector.shape_cast %574 : vector<8x1xf32> to vector<8x1xf32>
    %576 = vector.broadcast %575 : vector<8x1xf32> to vector<8x128xf32>
    %577 = arith.select %573, %576, %571 : vector<8x128xi1>, vector<8x128xf32>
    %c94_i32 = arith.constant 94 : i32
    %578 = vector.broadcast %c94_i32 : i32 to vector<8x128xi32>
    %579 = arith.cmpi eq, %6, %578 : vector<8x128xi32>
    %580 = vector.extract_strided_slice %8 {offsets = [0, 94], sizes = [8, 1], strides = [1, 1]} : vector<8x128xf32> to vector<8x1xf32>
    %581 = vector.shape_cast %580 : vector<8x1xf32> to vector<8x1xf32>
    %582 = vector.broadcast %581 : vector<8x1xf32> to vector<8x128xf32>
    %583 = arith.select %579, %582, %577 : vector<8x128xi1>, vector<8x128xf32>
    %c95_i32 = arith.constant 95 : i32
    %584 = vector.broadcast %c95_i32 : i32 to vector<8x128xi32>
    %585 = arith.cmpi eq, %6, %584 : vector<8x128xi32>
    %586 = vector.extract_strided_slice %8 {offsets = [0, 95], sizes = [8, 1], strides = [1, 1]} : vector<8x128xf32> to vector<8x1xf32>
    %587 = vector.shape_cast %586 : vector<8x1xf32> to vector<8x1xf32>
    %588 = vector.broadcast %587 : vector<8x1xf32> to vector<8x128xf32>
    %589 = arith.select %585, %588, %583 : vector<8x128xi1>, vector<8x128xf32>
    %c96_i32 = arith.constant 96 : i32
    %590 = vector.broadcast %c96_i32 : i32 to vector<8x128xi32>
    %591 = arith.cmpi eq, %6, %590 : vector<8x128xi32>
    %592 = vector.extract_strided_slice %8 {offsets = [0, 96], sizes = [8, 1], strides = [1, 1]} : vector<8x128xf32> to vector<8x1xf32>
    %593 = vector.shape_cast %592 : vector<8x1xf32> to vector<8x1xf32>
    %594 = vector.broadcast %593 : vector<8x1xf32> to vector<8x128xf32>
    %595 = arith.select %591, %594, %589 : vector<8x128xi1>, vector<8x128xf32>
    %c97_i32 = arith.constant 97 : i32
    %596 = vector.broadcast %c97_i32 : i32 to vector<8x128xi32>
    %597 = arith.cmpi eq, %6, %596 : vector<8x128xi32>
    %598 = vector.extract_strided_slice %8 {offsets = [0, 97], sizes = [8, 1], strides = [1, 1]} : vector<8x128xf32> to vector<8x1xf32>
    %599 = vector.shape_cast %598 : vector<8x1xf32> to vector<8x1xf32>
    %600 = vector.broadcast %599 : vector<8x1xf32> to vector<8x128xf32>
    %601 = arith.select %597, %600, %595 : vector<8x128xi1>, vector<8x128xf32>
    %c98_i32 = arith.constant 98 : i32
    %602 = vector.broadcast %c98_i32 : i32 to vector<8x128xi32>
    %603 = arith.cmpi eq, %6, %602 : vector<8x128xi32>
    %604 = vector.extract_strided_slice %8 {offsets = [0, 98], sizes = [8, 1], strides = [1, 1]} : vector<8x128xf32> to vector<8x1xf32>
    %605 = vector.shape_cast %604 : vector<8x1xf32> to vector<8x1xf32>
    %606 = vector.broadcast %605 : vector<8x1xf32> to vector<8x128xf32>
    %607 = arith.select %603, %606, %601 : vector<8x128xi1>, vector<8x128xf32>
    %c99_i32 = arith.constant 99 : i32
    %608 = vector.broadcast %c99_i32 : i32 to vector<8x128xi32>
    %609 = arith.cmpi eq, %6, %608 : vector<8x128xi32>
    %610 = vector.extract_strided_slice %8 {offsets = [0, 99], sizes = [8, 1], strides = [1, 1]} : vector<8x128xf32> to vector<8x1xf32>
    %611 = vector.shape_cast %610 : vector<8x1xf32> to vector<8x1xf32>
    %612 = vector.broadcast %611 : vector<8x1xf32> to vector<8x128xf32>
    %613 = arith.select %609, %612, %607 : vector<8x128xi1>, vector<8x128xf32>
    %c100_i32 = arith.constant 100 : i32
    %614 = vector.broadcast %c100_i32 : i32 to vector<8x128xi32>
    %615 = arith.cmpi eq, %6, %614 : vector<8x128xi32>
    %616 = vector.extract_strided_slice %8 {offsets = [0, 100], sizes = [8, 1], strides = [1, 1]} : vector<8x128xf32> to vector<8x1xf32>
    %617 = vector.shape_cast %616 : vector<8x1xf32> to vector<8x1xf32>
    %618 = vector.broadcast %617 : vector<8x1xf32> to vector<8x128xf32>
    %619 = arith.select %615, %618, %613 : vector<8x128xi1>, vector<8x128xf32>
    %c101_i32 = arith.constant 101 : i32
    %620 = vector.broadcast %c101_i32 : i32 to vector<8x128xi32>
    %621 = arith.cmpi eq, %6, %620 : vector<8x128xi32>
    %622 = vector.extract_strided_slice %8 {offsets = [0, 101], sizes = [8, 1], strides = [1, 1]} : vector<8x128xf32> to vector<8x1xf32>
    %623 = vector.shape_cast %622 : vector<8x1xf32> to vector<8x1xf32>
    %624 = vector.broadcast %623 : vector<8x1xf32> to vector<8x128xf32>
    %625 = arith.select %621, %624, %619 : vector<8x128xi1>, vector<8x128xf32>
    %c102_i32 = arith.constant 102 : i32
    %626 = vector.broadcast %c102_i32 : i32 to vector<8x128xi32>
    %627 = arith.cmpi eq, %6, %626 : vector<8x128xi32>
    %628 = vector.extract_strided_slice %8 {offsets = [0, 102], sizes = [8, 1], strides = [1, 1]} : vector<8x128xf32> to vector<8x1xf32>
    %629 = vector.shape_cast %628 : vector<8x1xf32> to vector<8x1xf32>
    %630 = vector.broadcast %629 : vector<8x1xf32> to vector<8x128xf32>
    %631 = arith.select %627, %630, %625 : vector<8x128xi1>, vector<8x128xf32>
    %c103_i32 = arith.constant 103 : i32
    %632 = vector.broadcast %c103_i32 : i32 to vector<8x128xi32>
    %633 = arith.cmpi eq, %6, %632 : vector<8x128xi32>
    %634 = vector.extract_strided_slice %8 {offsets = [0, 103], sizes = [8, 1], strides = [1, 1]} : vector<8x128xf32> to vector<8x1xf32>
    %635 = vector.shape_cast %634 : vector<8x1xf32> to vector<8x1xf32>
    %636 = vector.broadcast %635 : vector<8x1xf32> to vector<8x128xf32>
    %637 = arith.select %633, %636, %631 : vector<8x128xi1>, vector<8x128xf32>
    %c104_i32 = arith.constant 104 : i32
    %638 = vector.broadcast %c104_i32 : i32 to vector<8x128xi32>
    %639 = arith.cmpi eq, %6, %638 : vector<8x128xi32>
    %640 = vector.extract_strided_slice %8 {offsets = [0, 104], sizes = [8, 1], strides = [1, 1]} : vector<8x128xf32> to vector<8x1xf32>
    %641 = vector.shape_cast %640 : vector<8x1xf32> to vector<8x1xf32>
    %642 = vector.broadcast %641 : vector<8x1xf32> to vector<8x128xf32>
    %643 = arith.select %639, %642, %637 : vector<8x128xi1>, vector<8x128xf32>
    %c105_i32 = arith.constant 105 : i32
    %644 = vector.broadcast %c105_i32 : i32 to vector<8x128xi32>
    %645 = arith.cmpi eq, %6, %644 : vector<8x128xi32>
    %646 = vector.extract_strided_slice %8 {offsets = [0, 105], sizes = [8, 1], strides = [1, 1]} : vector<8x128xf32> to vector<8x1xf32>
    %647 = vector.shape_cast %646 : vector<8x1xf32> to vector<8x1xf32>
    %648 = vector.broadcast %647 : vector<8x1xf32> to vector<8x128xf32>
    %649 = arith.select %645, %648, %643 : vector<8x128xi1>, vector<8x128xf32>
    %c106_i32 = arith.constant 106 : i32
    %650 = vector.broadcast %c106_i32 : i32 to vector<8x128xi32>
    %651 = arith.cmpi eq, %6, %650 : vector<8x128xi32>
    %652 = vector.extract_strided_slice %8 {offsets = [0, 106], sizes = [8, 1], strides = [1, 1]} : vector<8x128xf32> to vector<8x1xf32>
    %653 = vector.shape_cast %652 : vector<8x1xf32> to vector<8x1xf32>
    %654 = vector.broadcast %653 : vector<8x1xf32> to vector<8x128xf32>
    %655 = arith.select %651, %654, %649 : vector<8x128xi1>, vector<8x128xf32>
    %c107_i32 = arith.constant 107 : i32
    %656 = vector.broadcast %c107_i32 : i32 to vector<8x128xi32>
    %657 = arith.cmpi eq, %6, %656 : vector<8x128xi32>
    %658 = vector.extract_strided_slice %8 {offsets = [0, 107], sizes = [8, 1], strides = [1, 1]} : vector<8x128xf32> to vector<8x1xf32>
    %659 = vector.shape_cast %658 : vector<8x1xf32> to vector<8x1xf32>
    %660 = vector.broadcast %659 : vector<8x1xf32> to vector<8x128xf32>
    %661 = arith.select %657, %660, %655 : vector<8x128xi1>, vector<8x128xf32>
    %c108_i32 = arith.constant 108 : i32
    %662 = vector.broadcast %c108_i32 : i32 to vector<8x128xi32>
    %663 = arith.cmpi eq, %6, %662 : vector<8x128xi32>
    %664 = vector.extract_strided_slice %8 {offsets = [0, 108], sizes = [8, 1], strides = [1, 1]} : vector<8x128xf32> to vector<8x1xf32>
    %665 = vector.shape_cast %664 : vector<8x1xf32> to vector<8x1xf32>
    %666 = vector.broadcast %665 : vector<8x1xf32> to vector<8x128xf32>
    %667 = arith.select %663, %666, %661 : vector<8x128xi1>, vector<8x128xf32>
    %c109_i32 = arith.constant 109 : i32
    %668 = vector.broadcast %c109_i32 : i32 to vector<8x128xi32>
    %669 = arith.cmpi eq, %6, %668 : vector<8x128xi32>
    %670 = vector.extract_strided_slice %8 {offsets = [0, 109], sizes = [8, 1], strides = [1, 1]} : vector<8x128xf32> to vector<8x1xf32>
    %671 = vector.shape_cast %670 : vector<8x1xf32> to vector<8x1xf32>
    %672 = vector.broadcast %671 : vector<8x1xf32> to vector<8x128xf32>
    %673 = arith.select %669, %672, %667 : vector<8x128xi1>, vector<8x128xf32>
    %c110_i32 = arith.constant 110 : i32
    %674 = vector.broadcast %c110_i32 : i32 to vector<8x128xi32>
    %675 = arith.cmpi eq, %6, %674 : vector<8x128xi32>
    %676 = vector.extract_strided_slice %8 {offsets = [0, 110], sizes = [8, 1], strides = [1, 1]} : vector<8x128xf32> to vector<8x1xf32>
    %677 = vector.shape_cast %676 : vector<8x1xf32> to vector<8x1xf32>
    %678 = vector.broadcast %677 : vector<8x1xf32> to vector<8x128xf32>
    %679 = arith.select %675, %678, %673 : vector<8x128xi1>, vector<8x128xf32>
    %c111_i32 = arith.constant 111 : i32
    %680 = vector.broadcast %c111_i32 : i32 to vector<8x128xi32>
    %681 = arith.cmpi eq, %6, %680 : vector<8x128xi32>
    %682 = vector.extract_strided_slice %8 {offsets = [0, 111], sizes = [8, 1], strides = [1, 1]} : vector<8x128xf32> to vector<8x1xf32>
    %683 = vector.shape_cast %682 : vector<8x1xf32> to vector<8x1xf32>
    %684 = vector.broadcast %683 : vector<8x1xf32> to vector<8x128xf32>
    %685 = arith.select %681, %684, %679 : vector<8x128xi1>, vector<8x128xf32>
    %c112_i32 = arith.constant 112 : i32
    %686 = vector.broadcast %c112_i32 : i32 to vector<8x128xi32>
    %687 = arith.cmpi eq, %6, %686 : vector<8x128xi32>
    %688 = vector.extract_strided_slice %8 {offsets = [0, 112], sizes = [8, 1], strides = [1, 1]} : vector<8x128xf32> to vector<8x1xf32>
    %689 = vector.shape_cast %688 : vector<8x1xf32> to vector<8x1xf32>
    %690 = vector.broadcast %689 : vector<8x1xf32> to vector<8x128xf32>
    %691 = arith.select %687, %690, %685 : vector<8x128xi1>, vector<8x128xf32>
    %c113_i32 = arith.constant 113 : i32
    %692 = vector.broadcast %c113_i32 : i32 to vector<8x128xi32>
    %693 = arith.cmpi eq, %6, %692 : vector<8x128xi32>
    %694 = vector.extract_strided_slice %8 {offsets = [0, 113], sizes = [8, 1], strides = [1, 1]} : vector<8x128xf32> to vector<8x1xf32>
    %695 = vector.shape_cast %694 : vector<8x1xf32> to vector<8x1xf32>
    %696 = vector.broadcast %695 : vector<8x1xf32> to vector<8x128xf32>
    %697 = arith.select %693, %696, %691 : vector<8x128xi1>, vector<8x128xf32>
    %c114_i32 = arith.constant 114 : i32
    %698 = vector.broadcast %c114_i32 : i32 to vector<8x128xi32>
    %699 = arith.cmpi eq, %6, %698 : vector<8x128xi32>
    %700 = vector.extract_strided_slice %8 {offsets = [0, 114], sizes = [8, 1], strides = [1, 1]} : vector<8x128xf32> to vector<8x1xf32>
    %701 = vector.shape_cast %700 : vector<8x1xf32> to vector<8x1xf32>
    %702 = vector.broadcast %701 : vector<8x1xf32> to vector<8x128xf32>
    %703 = arith.select %699, %702, %697 : vector<8x128xi1>, vector<8x128xf32>
    %c115_i32 = arith.constant 115 : i32
    %704 = vector.broadcast %c115_i32 : i32 to vector<8x128xi32>
    %705 = arith.cmpi eq, %6, %704 : vector<8x128xi32>
    %706 = vector.extract_strided_slice %8 {offsets = [0, 115], sizes = [8, 1], strides = [1, 1]} : vector<8x128xf32> to vector<8x1xf32>
    %707 = vector.shape_cast %706 : vector<8x1xf32> to vector<8x1xf32>
    %708 = vector.broadcast %707 : vector<8x1xf32> to vector<8x128xf32>
    %709 = arith.select %705, %708, %703 : vector<8x128xi1>, vector<8x128xf32>
    %c116_i32 = arith.constant 116 : i32
    %710 = vector.broadcast %c116_i32 : i32 to vector<8x128xi32>
    %711 = arith.cmpi eq, %6, %710 : vector<8x128xi32>
    %712 = vector.extract_strided_slice %8 {offsets = [0, 116], sizes = [8, 1], strides = [1, 1]} : vector<8x128xf32> to vector<8x1xf32>
    %713 = vector.shape_cast %712 : vector<8x1xf32> to vector<8x1xf32>
    %714 = vector.broadcast %713 : vector<8x1xf32> to vector<8x128xf32>
    %715 = arith.select %711, %714, %709 : vector<8x128xi1>, vector<8x128xf32>
    %c117_i32 = arith.constant 117 : i32
    %716 = vector.broadcast %c117_i32 : i32 to vector<8x128xi32>
    %717 = arith.cmpi eq, %6, %716 : vector<8x128xi32>
    %718 = vector.extract_strided_slice %8 {offsets = [0, 117], sizes = [8, 1], strides = [1, 1]} : vector<8x128xf32> to vector<8x1xf32>
    %719 = vector.shape_cast %718 : vector<8x1xf32> to vector<8x1xf32>
    %720 = vector.broadcast %719 : vector<8x1xf32> to vector<8x128xf32>
    %721 = arith.select %717, %720, %715 : vector<8x128xi1>, vector<8x128xf32>
    %c118_i32 = arith.constant 118 : i32
    %722 = vector.broadcast %c118_i32 : i32 to vector<8x128xi32>
    %723 = arith.cmpi eq, %6, %722 : vector<8x128xi32>
    %724 = vector.extract_strided_slice %8 {offsets = [0, 118], sizes = [8, 1], strides = [1, 1]} : vector<8x128xf32> to vector<8x1xf32>
    %725 = vector.shape_cast %724 : vector<8x1xf32> to vector<8x1xf32>
    %726 = vector.broadcast %725 : vector<8x1xf32> to vector<8x128xf32>
    %727 = arith.select %723, %726, %721 : vector<8x128xi1>, vector<8x128xf32>
    %c119_i32 = arith.constant 119 : i32
    %728 = vector.broadcast %c119_i32 : i32 to vector<8x128xi32>
    %729 = arith.cmpi eq, %6, %728 : vector<8x128xi32>
    %730 = vector.extract_strided_slice %8 {offsets = [0, 119], sizes = [8, 1], strides = [1, 1]} : vector<8x128xf32> to vector<8x1xf32>
    %731 = vector.shape_cast %730 : vector<8x1xf32> to vector<8x1xf32>
    %732 = vector.broadcast %731 : vector<8x1xf32> to vector<8x128xf32>
    %733 = arith.select %729, %732, %727 : vector<8x128xi1>, vector<8x128xf32>
    %c120_i32 = arith.constant 120 : i32
    %734 = vector.broadcast %c120_i32 : i32 to vector<8x128xi32>
    %735 = arith.cmpi eq, %6, %734 : vector<8x128xi32>
    %736 = vector.extract_strided_slice %8 {offsets = [0, 120], sizes = [8, 1], strides = [1, 1]} : vector<8x128xf32> to vector<8x1xf32>
    %737 = vector.shape_cast %736 : vector<8x1xf32> to vector<8x1xf32>
    %738 = vector.broadcast %737 : vector<8x1xf32> to vector<8x128xf32>
    %739 = arith.select %735, %738, %733 : vector<8x128xi1>, vector<8x128xf32>
    %c121_i32 = arith.constant 121 : i32
    %740 = vector.broadcast %c121_i32 : i32 to vector<8x128xi32>
    %741 = arith.cmpi eq, %6, %740 : vector<8x128xi32>
    %742 = vector.extract_strided_slice %8 {offsets = [0, 121], sizes = [8, 1], strides = [1, 1]} : vector<8x128xf32> to vector<8x1xf32>
    %743 = vector.shape_cast %742 : vector<8x1xf32> to vector<8x1xf32>
    %744 = vector.broadcast %743 : vector<8x1xf32> to vector<8x128xf32>
    %745 = arith.select %741, %744, %739 : vector<8x128xi1>, vector<8x128xf32>
    %c122_i32 = arith.constant 122 : i32
    %746 = vector.broadcast %c122_i32 : i32 to vector<8x128xi32>
    %747 = arith.cmpi eq, %6, %746 : vector<8x128xi32>
    %748 = vector.extract_strided_slice %8 {offsets = [0, 122], sizes = [8, 1], strides = [1, 1]} : vector<8x128xf32> to vector<8x1xf32>
    %749 = vector.shape_cast %748 : vector<8x1xf32> to vector<8x1xf32>
    %750 = vector.broadcast %749 : vector<8x1xf32> to vector<8x128xf32>
    %751 = arith.select %747, %750, %745 : vector<8x128xi1>, vector<8x128xf32>
    %c123_i32 = arith.constant 123 : i32
    %752 = vector.broadcast %c123_i32 : i32 to vector<8x128xi32>
    %753 = arith.cmpi eq, %6, %752 : vector<8x128xi32>
    %754 = vector.extract_strided_slice %8 {offsets = [0, 123], sizes = [8, 1], strides = [1, 1]} : vector<8x128xf32> to vector<8x1xf32>
    %755 = vector.shape_cast %754 : vector<8x1xf32> to vector<8x1xf32>
    %756 = vector.broadcast %755 : vector<8x1xf32> to vector<8x128xf32>
    %757 = arith.select %753, %756, %751 : vector<8x128xi1>, vector<8x128xf32>
    %c124_i32 = arith.constant 124 : i32
    %758 = vector.broadcast %c124_i32 : i32 to vector<8x128xi32>
    %759 = arith.cmpi eq, %6, %758 : vector<8x128xi32>
    %760 = vector.extract_strided_slice %8 {offsets = [0, 124], sizes = [8, 1], strides = [1, 1]} : vector<8x128xf32> to vector<8x1xf32>
    %761 = vector.shape_cast %760 : vector<8x1xf32> to vector<8x1xf32>
    %762 = vector.broadcast %761 : vector<8x1xf32> to vector<8x128xf32>
    %763 = arith.select %759, %762, %757 : vector<8x128xi1>, vector<8x128xf32>
    %c125_i32 = arith.constant 125 : i32
    %764 = vector.broadcast %c125_i32 : i32 to vector<8x128xi32>
    %765 = arith.cmpi eq, %6, %764 : vector<8x128xi32>
    %766 = vector.extract_strided_slice %8 {offsets = [0, 125], sizes = [8, 1], strides = [1, 1]} : vector<8x128xf32> to vector<8x1xf32>
    %767 = vector.shape_cast %766 : vector<8x1xf32> to vector<8x1xf32>
    %768 = vector.broadcast %767 : vector<8x1xf32> to vector<8x128xf32>
    %769 = arith.select %765, %768, %763 : vector<8x128xi1>, vector<8x128xf32>
    %c126_i32 = arith.constant 126 : i32
    %770 = vector.broadcast %c126_i32 : i32 to vector<8x128xi32>
    %771 = arith.cmpi eq, %6, %770 : vector<8x128xi32>
    %772 = vector.extract_strided_slice %8 {offsets = [0, 126], sizes = [8, 1], strides = [1, 1]} : vector<8x128xf32> to vector<8x1xf32>
    %773 = vector.shape_cast %772 : vector<8x1xf32> to vector<8x1xf32>
    %774 = vector.broadcast %773 : vector<8x1xf32> to vector<8x128xf32>
    %775 = arith.select %771, %774, %769 : vector<8x128xi1>, vector<8x128xf32>
    %c127_i32 = arith.constant 127 : i32
    %776 = vector.broadcast %c127_i32 : i32 to vector<8x128xi32>
    %777 = arith.cmpi eq, %6, %776 : vector<8x128xi32>
    %778 = vector.extract_strided_slice %8 {offsets = [0, 127], sizes = [8, 1], strides = [1, 1]} : vector<8x128xf32> to vector<8x1xf32>
    %779 = vector.shape_cast %778 : vector<8x1xf32> to vector<8x1xf32>
    %780 = vector.broadcast %779 : vector<8x1xf32> to vector<8x128xf32>
    %781 = arith.select %777, %780, %775 : vector<8x128xi1>, vector<8x128xf32>
    %782 = arith.index_cast %2 : i32 to index
    %c0_5 = arith.constant 0 : index
    %783 = vector.load %arg5[%782, %c0_5] : memref<8x128xf32, #tpu.memory_space<vmem>>, vector<8x128xf32>
    tpu.vector_store %arg5[%782, %c0_5], %781 {strides = array<i32>} : memref<8x128xf32, #tpu.memory_space<vmem>>, vector<8x128xf32>,
    %c1_i32_6 = arith.constant 1 : i32
    return
  }
  func.func @transform_0(%arg0: i32, %arg1: i32, %arg2: i32) -> (i32, i32) {
    %c0_i32 = arith.constant 0 : i32
    return %arg0, %arg2 : i32, i32
  }
  func.func @transform_1(%arg0: i32, %arg1: i32, %arg2: i32) -> (i32, i32) {
    %c0_i32 = arith.constant 0 : i32
    return %arg0, %arg1 : i32, i32
  }
  func.func @transform_2(%arg0: i32, %arg1: i32, %arg2: i32) -> (i32, i32) {
    %c0_i32 = arith.constant 0 : i32
    return %arg0, %arg1 : i32, i32
  }
}

</mosaic_0001>

<bundles_post_ra>
// kernel: tpu_custom_call.1
= control target key start
LH: loop header
LB: loop body
LE: loop exit
PB: predicated region body
PF: predicated region fallthrough
CT: control target
= control target key end

     0   :  { %7 = vsyncpa [#allocation3], 0  ;;  %s2281_s0 = inlined_call_operand.hbm [shape: f32[16,128], index: 0, kind: input, shape index: {}]   ;;  %s2282_s1 = inlined_call_operand.hbm [shape: s32[16,128], index: 1, kind: input, shape index: {}]   ;;  %s2283_s2 = inlined_call_operand.hbm [shape: f32[16,128], index: 2, kind: output, shape index: {}]  }
   0x1   :  { %9 = vsyncpa [#allocation3 + $0x1], 0 }
   0x2   :  { %10 = vsyncpa [#allocation6], 0 }
   0x3   :  { %12 = vsyncpa [#allocation6 + $0x1], 0 }
   0x4   :  { %13 = vsyncpa [#allocation4], 0 }
   0x5   :  { %15 = vsyncpa [#allocation4 + $0x1], 0  ;;  %s1756_s9 = smov 0   ;;  %s1758_s10 = smov 0  }
   0x6   :  { %s1760_s11 = smov 0   ;;  %s1762_s12 = smov 0  }
   0x7   :  { %s1764_s13 = smov 0   ;;  %s1766_s14 = smov 0  }
   0x8 LB: > { %s1126_s15 = sadd.s32 4294967295, %s1608_s14   ;;  %s1127_s16 = sadd.s32 4294967294, %s1608_s14   ;;  %s1608_s14 = sphi %s1766_s14, %s21_s14   ;;  %s1604_s13 = sphi %s1764_s13, %s2295_s13   ;;  %s1600_s12 = sphi %s1762_s12, %s2294_s12   ;;  %s1596_s11 = sphi %s1760_s11, %s2293_s11   ;;  %s1592_s10 = sphi %s1758_s10, %s2292_s10   ;;  %s1588_s9 = sphi %s1756_s9, %s2291_s9  }
   0x9   : > { %s40_s17 = sadd.s32 1, %s1604_s13  ;;  %s49_s18 = sadd.s32 1, %s1596_s11 }
   0xa   : > { %p42_p0 = scmp.ge.s32.totalorder %s40_s17, 2  ;;  %p56_p1 = scmp.ne.s32.totalorder %s1596_s11, %s1592_s10 }
   0xb   : > { %p57_p2 = scmp.eq.s32.totalorder %s1608_s14, 0  ;;  %p62_p3 = scmp.ne.s32.totalorder %s1592_s10, %s1588_s9 }
   0xc   : > { %s2297_s17 = smov (%p42_p0, %s40_s17), 0  ;;  %p63_p5 = scmp.eq.s32.totalorder %s1126_s15, 0 }
   0xd   : > { %p1797_p4 = por %p57_p2, %p56_p1  ;;  %s44_s20 = ssub.s32 %s1604_s13, %s2297_s17 }
   0xe   : > { %p116_p6 = scmp.eq.s32.totalorder %s1126_s15, 1  ;;  %p47_p7 = scmp.eq.s32.totalorder %s44_s20, 0 }
   0xf   : > { %p1803_p8 = por %p63_p5, %p62_p3  ;;  %p122_p10 = scmp.eq.s32.totalorder %s1127_s16, 1 }
  0x10   : > { %p1807_p9 = por %p116_p6, %p56_p1  ;;  %p1159_p13 = scmp.lt.s32.totalorder %s1608_s14, 2 }
  0x11   : > { %s1812_s23 = scalar_select %p47_p7, %s1596_s11, %s49_s18  }
  0x12   : > { %p1814_p11 = por %p122_p10, %p62_p3  ;;  %s1821_s25 = sand.u32 1, %s1596_s11  }
  0x13   : > { %s1130_s26 = sshll.u32 %s1821_s25, 3  ;;  %s1131_s27 = sshll.u32 %s1604_s13, 7 }
  0x14   : > { %s152_s30 = scalar_lea.hbm %s2281_s0, %s1131_s27  ;;  %s146_s3 = scalar_lea.vmem [#allocation2], %s1130_s26 }
  0x15   : > { %s154_s4 = sshll.u32 %s146_s3, 4  ;;  %p1830_p0 = pnand %p1159_p13, %p1797_p4  ;;  %s155_s4 = int_to_ptr.vmem [resolvable:$true] %s154_s4 }
  0x16   : > { %p1134_p1 = scmp.ge.s32.totalorder %s1608_s14, 1  ;;  %p178_p2 = scmp.lt.s32.totalorder %s1608_s14, 3 }
  0x17   : > { %s143_s6 = scalar_lea.sflag [#allocation3], %s1821_s25  ;;  %p1470_p3 = pneg %p1830_p0 }
  0x18   : > { %s1481_s7 = scalar_lea.vmem %s155_s4, 128  ;;  %s1610_s8 = smov [#allocation2]  }
  0x19   : > { %p1482_p5 = scmp.ne.s32.totalorder %s155_s4, %s1481_s7  ;;  %s1486_s15 = sshll.u32 %s1610_s8, 4  ;;  %s1487_s15 = int_to_ptr.vmem [resolvable:$false] %s1486_s15 }
  0x1a   : > { %s1488_s16 = scalar_lea.vmem %s1487_s15, 256  ;;  %p1489_p4 = scmp.lt.s32.totalorder %s155_s4, %s1487_s15 }
  0x1b   : > { %p1484_p6 = pnand %p1482_p5, %p1470_p3  ;;  %p1490_p10 = scmp.lt.s32.totalorder %s1488_s16, %s1481_s7 }
  0x1d   : > { %p1485_p7 = pneg %p1484_p6  ;;  %p1491_p13 = por %p1490_p10, %p1489_p4 }
  0x1f   : > { %p1492_p12 = pnand %p1491_p13, %p1485_p7 }
  0x21   : > { %1495 = shalt.err (!%p1492_p12)
}
  0x22   : > { %1151 = dma.hbm_to_vmem [thread:$0]  (!%p1830_p0), %s152_s30, 128, %s155_s4, %s143_s6  }
  0x23   : > { %p1848_p5 = pnand %p1134_p1, %p178_p2  ;;  %s171_s28 = scalar_lea.hbm %s2282_s1, %s1131_s27 }
  0x24   : > { %s165_s29 = scalar_lea.vmem [#allocation5], %s1130_s26  ;;  %s162_s7 = scalar_lea.sflag [#allocation6], %s1821_s25 }
  0x25   : > { %s173_s3 = sshll.u32 %s165_s29, 4  ;;  %s1611_s30 = smov [#allocation5]   ;;  %s174_s3 = int_to_ptr.vmem [resolvable:$true] %s173_s3 }
  0x26   : > { %s1509_s8 = scalar_lea.vmem %s174_s3, 128  ;;  %s1514_s4 = sshll.u32 %s1611_s30, 4  ;;  %s1515_s4 = int_to_ptr.vmem [resolvable:$false] %s1514_s4 }
  0x27   : > { %p1510_p12 = scmp.ne.s32.totalorder %s174_s3, %s1509_s8  ;;  %s1516_s6 = scalar_lea.vmem %s1515_s4, 256 }
  0x28   : > { %p1517_p1 = scmp.lt.s32.totalorder %s174_s3, %s1515_s4  ;;  %p1518_p2 = scmp.lt.s32.totalorder %s1516_s6, %s1509_s8 }
  0x29   : > { %p1512_p6 = pnand %p1510_p12, %p1470_p3 }
  0x2a   : > { %p1519_p4 = por %p1518_p2, %p1517_p1 }
  0x2b   : > { %p1513_p7 = pneg %p1512_p6 }
  0x2d   : > { %p1520_p10 = pnand %p1519_p4, %p1513_p7 }
  0x2f   : > { %1523 = shalt.err (!%p1520_p10)
}
  0x30   : > { %1154 = dma.hbm_to_vmem [thread:$0]  (!%p1830_p0), %s171_s28, 128, %s174_s3, %s162_s7  }
  0x31   : > { %182 = sbr.rel (%p1848_p5) target bundleno = 617 (0x269), region = 28  ;;  %s1864_s25 = sand.u32 (!%p1848_p5), 1, %s1592_s10  }
  0x32   : > { %s1867_s26 = sshll.u32 (!%p1848_p5), %s1864_s25, 3  ;;  %s185_s27 = scalar_lea.sflag (!%p1848_p5), [#allocation3], %s1864_s25 }
  0x33   : > { %s188_s15 = scalar_lea.vmem (!%p1848_p5), [#allocation2], %s1867_s26 }
  0x36   : > { %1575 = dma.done.wait (%p1803_p8), %s185_s27, 128  }
  0x37   : > { %1577 = vsyncadd (%p1803_p8), %s185_s27, 4294967168  ;;  %s194_s5 = scalar_lea.sflag [#allocation6], %s1864_s25  ;;  %s197_s16 = scalar_lea.vmem [#allocation5], %s1867_s26 }
  0x38   : > { %1579 = dma.done.wait (%p1803_p8), %s194_s5, 128  }
  0x39   : > { %1581 = vsyncadd (%p1803_p8), %s194_s5, 4294967168  ;;  %v1612_v0 = vmov 2   ;;  %v1613_v1 = vmov 0   ;;  %v1883_v2 = vld [vmem:[%s188_s15] sm:$0xff]  ;;  %v1614_v3 = vmov 3   ;;  %v1615_v4 = vmov 1  }
  0x3a   : > { %1339 = vset.pattern.permute.xlu1 %v1612_v0  ;;  %1337 = vset.pattern.permute.xlu0 %v1613_v1  ;;  %v1616_v5 = vmov 4   ;;  %v1617_v6 = vmov 5   ;;  %v1618_v7 = vmov 6   ;;  %v1619_v8 = vmov 8   ;;  %s1139_s21 = sshll.u32 %s1600_s12, 7  ;;  %s222_s18 = scalar_lea.vmem [#allocation7], %s1867_s26 }
  0x3b   : > { %249 = vperm.xlu1 %1339, %v1883_v2   ;;  %237 = vperm.xlu0 %1337, %v1883_v2   ;;  %v1620_v9 = vmov 7   ;;  %v1621_v10 = vmov 11   ;;  %v1622_v11 = vmov 9   ;;  %v1623_v12 = vmov 14   ;;  %s1019_s19 = sshll.u32 %s222_s18, 4  ;;  %s2239_s29 = scalar_lea.hbm %s2283_s2, %s1139_s21  ;;  %s1020_s19 = int_to_ptr.vmem [resolvable:$true] %s1019_s19 }
  0x3c   : > { %v1624_v13 = vmov 10   ;;  %v1625_v14 = vmov 17   ;;  %v1626_v15 = vmov 12   ;;  %v1627_v16 = vmov 20   ;;  %s1005_s3 = scalar_lea.sflag [#allocation4], %s1864_s25  ;;  %s1524_s7 = scalar_lea.vmem %s1020_s19, 128 }
  0x3d   : > { %v1628_v17 = vmov 13   ;;  %v1629_v18 = vmov 23   ;;  %v1630_v19 = vmov 15   ;;  %v1631_v20 = vmov 26   ;;  %p1525_p8 = scmp.ne.s32.totalorder %s1020_s19, %s1524_s7  ;;  %s1740_s12 = smov [#allocation7]  }
  0x3e   : > { %v1632_v21 = vmov 16   ;;  %v1633_v22 = vmov 29   ;;  %v1634_v23 = vmov 18   ;;  %v1635_v24 = vmov 32   ;;  %s1528_s8 = sshll.u32 %s1740_s12, 4  ;;  %s1529_s8 = int_to_ptr.vmem [resolvable:$false] %s1528_s8 }
  0x3f   : > { %1340 = vset.pattern.permute.xlu1 %v1614_v3  ;;  %1338 = vset.pattern.permute.xlu0 %v1615_v4  ;;  %v1636_v25 = vmov 19   ;;  %v1637_v26 = vmov 35   ;;  %v1638_v27 = vmov 21   ;;  %v1639_v28 = vmov 38   ;;  %p1526_p0 = pnand %p1525_p8, %p1807_p9  ;;  %s1530_s30 = scalar_lea.vmem %s1529_s8, 256 }
  0x40   : > { %255 = vperm.xlu1 %1340, %v1883_v2   ;;  %243 = vperm.xlu0 %1338, %v1883_v2   ;;  %v1640_v29 = vmov 22   ;;  %v1641_v30 = vmov 41   ;;  %v1642_v31 = vmov 24   ;;  %v1643_v32 = vmov 44   ;;  %p1531_p13 = scmp.lt.s32.totalorder %s1020_s19, %s1529_s8  ;;  %p1532_p5 = scmp.lt.s32.totalorder %s1530_s30, %s1524_s7 }
  0x41   : > { %v1644_v33 = vmov 25   ;;  %v1645_v34 = vmov 47   ;;  %v1646_v35 = vmov 27   ;;  %v1647_v36 = vmov 50   ;;  %p1527_p3 = pneg %p1526_p0 }
  0x42   : > { %v1648_v37 = vmov 28   ;;  %v1649_v38 = vmov 53   ;;  %v1650_v39 = vmov 30   ;;  %v1651_v40 = vmov 56   ;;  %p1533_p12 = por %p1532_p5, %p1531_p13 }
  0x43   : > { %v1652_v41 = vmov 31   ;;  %v1653_v42 = vmov 59   ;;  %v1654_v43 = vmov 33   ;;  %v1655_v44 = vmov 62  }
  0x44   : > { %1341 = vset.pattern.permute.xlu1 %v1616_v5  ;;  %1342 = vset.pattern.permute.xlu0 %v1617_v6  ;;  %v1656_v45 = vmov 34   ;;  %v1657_v46 = vmov 65   ;;  %v1658_v47 = vmov 36   ;;  %v1659_v48 = vmov 68   ;;  %p1534_p6 = pnand %p1533_p12, %p1527_p3 }
  0x45   : > { %261 = vperm.xlu1 %1341, %v1883_v2   ;;  %267 = vperm.xlu0 %1342, %v1883_v2   ;;  %v1660_v49 = vmov 37   ;;  %v1661_v50 = vmov 71   ;;  %v1662_v52 = vmov 39   ;;  %v1663_v53 = vmov 74  }
  0x46   : > { %v1664_v55 = vmov 40   ;;  %v1665_v56 = vmov 77   ;;  %v1666_v58 = vmov 42   ;;  %v1667_v59 = vmov 80  }
  0x47   : > { %v1668_v61 = vmov 43   ;;  %v1669_v62 = vmov 83   ;;  %v1670_v0 = vmov 45   ;;  %v1671_v3 = vmov 46  }
  0x48   : > { %v1672_v4 = vmov 86   ;;  %v1673_v6 = vmov 48  }
  0x49   : > { %1343 = vset.pattern.permute.xlu1 %v1618_v7  ;;  %1345 = vset.pattern.permute.xlu0 %v1619_v8  ;;  %v1674_v8 = vmov 49  }
  0x4a   : > { %273 = vperm.xlu1 %1343, %v1883_v2   ;;  %285 = vperm.xlu0 %1345, %v1883_v2  }
  0x4e   : > { %1344 = vset.pattern.permute.xlu1 %v1620_v9  ;;  %1348 = vset.pattern.permute.xlu0 %v1621_v10  ;;  %v1675_v9 = vmov 89  }
  0x4f   : > { %279 = vperm.xlu1 %1344, %v1883_v2   ;;  %303 = vperm.xlu0 %1348, %v1883_v2  }
  0x53   : > { %1346 = vset.pattern.permute.xlu1 %v1622_v11  ;;  %1351 = vset.pattern.permute.xlu0 %v1623_v12  ;;  %v1676_v11 = vmov 51  }
  0x54   : > { %291 = vperm.xlu1 %1346, %v1883_v2   ;;  %321 = vperm.xlu0 %1351, %v1883_v2  }
  0x58   : > { %1347 = vset.pattern.permute.xlu1 %v1624_v13  ;;  %1354 = vset.pattern.permute.xlu0 %v1625_v14  ;;  %v1677_v13 = vmov 52   ;;  %v1678_v14 = vmov 92  }
  0x59   : > { %297 = vperm.xlu1 %1347, %v1883_v2   ;;  %339 = vperm.xlu0 %1354, %v1883_v2  }
  0x5d   : > { %1349 = vset.pattern.permute.xlu1 %v1626_v15  ;;  %1357 = vset.pattern.permute.xlu0 %v1627_v16  ;;  %v1679_v16 = vmov 54  }
  0x5e   : > { %309 = vperm.xlu1 %1349, %v1883_v2   ;;  %357 = vperm.xlu0 %1357, %v1883_v2  }
  0x62   : > { %1350 = vset.pattern.permute.xlu1 %v1628_v17  ;;  %1360 = vset.pattern.permute.xlu0 %v1629_v18  ;;  %v1680_v18 = vmov 55  }
  0x63   : > { %315 = vperm.xlu1 %1350, %v1883_v2   ;;  %375 = vperm.xlu0 %1360, %v1883_v2  }
  0x67   : > { %1352 = vset.pattern.permute.xlu1 %v1630_v19  ;;  %1363 = vset.pattern.permute.xlu0 %v1631_v20  ;;  %v1681_v19 = vmov 95  }
  0x68   : > { %327 = vperm.xlu1 %1352, %v1883_v2   ;;  %393 = vperm.xlu0 %1363, %v1883_v2  }
  0x6c   : > { %1353 = vset.pattern.permute.xlu1 %v1632_v21  ;;  %1366 = vset.pattern.permute.xlu0 %v1633_v22  ;;  %v1682_v21 = vmov 57  }
  0x6d   : > { %333 = vperm.xlu1 %1353, %v1883_v2   ;;  %411 = vperm.xlu0 %1366, %v1883_v2  }
  0x71   : > { %1355 = vset.pattern.permute.xlu1 %v1634_v23  ;;  %1369 = vset.pattern.permute.xlu0 %v1635_v24  ;;  %v1683_v23 = vmov 58   ;;  %v1684_v24 = vmov 98  }
  0x72   : > { %345 = vperm.xlu1 %1355, %v1883_v2   ;;  %429 = vperm.xlu0 %1369, %v1883_v2  }
  0x76   : > { %1356 = vset.pattern.permute.xlu1 %v1636_v25  ;;  %1372 = vset.pattern.permute.xlu0 %v1637_v26  ;;  %v1685_v26 = vmov 60  }
  0x77   : > { %351 = vperm.xlu1 %1356, %v1883_v2   ;;  %447 = vperm.xlu0 %1372, %v1883_v2  }
  0x7b   : > { %1358 = vset.pattern.permute.xlu1 %v1638_v27  ;;  %1375 = vset.pattern.permute.xlu0 %v1639_v28  ;;  %v1686_v28 = vmov 61  }
  0x7c   : > { %363 = vperm.xlu1 %1358, %v1883_v2   ;;  %465 = vperm.xlu0 %1375, %v1883_v2  }
  0x80   : > { %1359 = vset.pattern.permute.xlu1 %v1640_v29  ;;  %1378 = vset.pattern.permute.xlu0 %v1641_v30  ;;  %v1687_v29 = vmov 101  }
  0x81   : > { %369 = vperm.xlu1 %1359, %v1883_v2   ;;  %483 = vperm.xlu0 %1378, %v1883_v2  }
  0x85   : > { %1361 = vset.pattern.permute.xlu1 %v1642_v31  ;;  %1381 = vset.pattern.permute.xlu0 %v1643_v32  ;;  %v1997_v31 = vld [vmem:[%s197_s16] sm:$0xff] }
  0x86   : > { %381 = vperm.xlu1 %1361, %v1883_v2   ;;  %501 = vperm.xlu0 %1381, %v1883_v2   ;;  %vm234_vm0 = vcmp.eq.s32.totalorder %v1997_v31, 0  ;;  %vm241_vm1 = vcmp.eq.s32.totalorder %v1997_v31, 1  ;;  %vm247_vm2 = vcmp.eq.s32.totalorder %v1997_v31, 2  ;;  %vm253_vm3 = vcmp.eq.s32.totalorder %v1997_v31, 3 }
  0x87   : > { %vm259_vm4 = vcmp.eq.s32.totalorder %v1997_v31, 4  ;;  %vm265_vm5 = vcmp.eq.s32.totalorder %v1997_v31, 5  ;;  %vm271_vm6 = vcmp.eq.s32.totalorder %v1997_v31, 6  ;;  %vm277_vm7 = vcmp.eq.s32.totalorder %v1997_v31, 7 }
  0x88   : > { %vm283_vm8 = vcmp.eq.s32.totalorder %v1997_v31, 8  ;;  %vm289_vm9 = vcmp.eq.s32.totalorder %v1997_v31, 9  ;;  %vm295_vm10 = vcmp.eq.s32.totalorder %v1997_v31, 10  ;;  %vm301_vm11 = vcmp.eq.s32.totalorder %v1997_v31, 11 }
  0x89   : > { %vm307_vm12 = vcmp.eq.s32.totalorder %v1997_v31, 12  ;;  %vm313_vm13 = vcmp.eq.s32.totalorder %v1997_v31, 13  ;;  %vm319_vm14 = vcmp.eq.s32.totalorder %v1997_v31, 14  ;;  %vm325_vm15 = vcmp.eq.s32.totalorder %v1997_v31, 15 }
  0x8a   : > { %1362 = vset.pattern.permute.xlu1 %v1644_v33  ;;  %1384 = vset.pattern.permute.xlu0 %v1645_v34  ;;  %v1688_v33 = vmov 63  }
  0x8b   : > { %387 = vperm.xlu1 %1362, %v1883_v2   ;;  %519 = vperm.xlu0 %1384, %v1883_v2  }
  0x8f   : > { %1364 = vset.pattern.permute.xlu1 %v1646_v35  ;;  %1387 = vset.pattern.permute.xlu0 %v1647_v36  ;;  %v1689_v35 = vmov 64  }
  0x90   : > { %399 = vperm.xlu1 %1364, %v1883_v2   ;;  %537 = vperm.xlu0 %1387, %v1883_v2  }
  0x94   : > { %1365 = vset.pattern.permute.xlu1 %v1648_v37  ;;  %1390 = vset.pattern.permute.xlu0 %v1649_v38  ;;  %v1690_v38 = vmov 104  }
  0x95   : > { %405 = vperm.xlu1 %1365, %v1883_v2   ;;  %555 = vperm.xlu0 %1390, %v1883_v2  }
  0x99   : > { %1367 = vset.pattern.permute.xlu1 %v1650_v39  ;;  %1393 = vset.pattern.permute.xlu0 %v1651_v40 }
  0x9a   : > { %417 = vperm.xlu1 %1367, %v1883_v2   ;;  %573 = vperm.xlu0 %1393, %v1883_v2  }
  0x9e   : > { %1368 = vset.pattern.permute.xlu1 %v1652_v41  ;;  %1396 = vset.pattern.permute.xlu0 %v1653_v42  ;;  %v1691_v41 = vmov 66  }
  0x9f   : > { %423 = vperm.xlu1 %1368, %v1883_v2   ;;  %591 = vperm.xlu0 %1396, %v1883_v2  }
  0xa3   : > { %1370 = vset.pattern.permute.xlu1 %v1654_v43  ;;  %1399 = vset.pattern.permute.xlu0 %v1655_v44 }
  0xa4   : > { %435 = vperm.xlu1 %1370, %v1883_v2   ;;  %609 = vperm.xlu0 %1399, %v1883_v2  }
  0xa8   : > { %1371 = vset.pattern.permute.xlu1 %v1656_v45  ;;  %1402 = vset.pattern.permute.xlu0 %v1657_v46  ;;  %v1692_v45 = vmov 67  }
  0xa9   : > { %441 = vperm.xlu1 %1371, %v1883_v2   ;;  %627 = vperm.xlu0 %1402, %v1883_v2  }
  0xad   : > { %1373 = vset.pattern.permute.xlu1 %v1658_v47  ;;  %1405 = vset.pattern.permute.xlu0 %v1659_v48  ;;  %v1693_v48 = vmov 107  }
  0xae   : > { %453 = vperm.xlu1 %1373, %v1883_v2   ;;  %645 = vperm.xlu0 %1405, %v1883_v2  }
  0xb2   : > { %1374 = vset.pattern.permute.xlu1 %v1660_v49  ;;  %1408 = vset.pattern.permute.xlu0 %v1661_v50 }
  0xb3   : > { %459 = vperm.xlu1 %1374, %v1883_v2   ;;  %663 = vperm.xlu0 %1408, %v1883_v2  }
  0xb6   : > { %v1935_v51 = vpop.permute.xlu1 %249  ;;  %v238_v32 = vpop.permute.xlu0 %237 }
  0xb7   : > { %1376 = vset.pattern.permute.xlu1 %v1662_v52  ;;  %1411 = vset.pattern.permute.xlu0 %v1663_v53  ;;  %v240_v36 = vsel %vm234_vm0, %v238_v32, 0.0  ;;  %v1694_v52 = vmov 69   ;;  %vm331_vm0 = vcmp.eq.s32.totalorder %v1997_v31, 16  ;;  %v1703_v32 = vmov 78  }
  0xb8   : > { %471 = vperm.xlu1 %1376, %v1883_v2   ;;  %681 = vperm.xlu0 %1411, %v1883_v2  }
  0xbb   : > { %v1939_v54 = vpop.permute.xlu1 %255  ;;  %v244_v37 = vpop.permute.xlu0 %243 }
  0xbc   : > { %1377 = vset.pattern.permute.xlu1 %v1664_v55  ;;  %1414 = vset.pattern.permute.xlu0 %v1665_v56  ;;  %v246_v39 = vsel %vm241_vm1, %v244_v37, %v240_v36  ;;  %vm337_vm1 = vcmp.eq.s32.totalorder %v1997_v31, 17 }
  0xbd   : > { %477 = vperm.xlu1 %1377, %v1883_v2   ;;  %699 = vperm.xlu0 %1414, %v1883_v2   ;;  %v252_v42 = vsel %vm247_vm2, %v1935_v51, %v246_v39  ;;  %vm343_vm2 = vcmp.eq.s32.totalorder %v1997_v31, 18 }
  0xbe   : > { %v258_v44 = vsel %vm253_vm3, %v1939_v54, %v252_v42  ;;  %vm349_vm3 = vcmp.eq.s32.totalorder %v1997_v31, 19 }
  0xc0   : > { %v1943_v57 = vpop.permute.xlu1 %261  ;;  %v268_v47 = vpop.permute.xlu0 %267 }
  0xc1   : > { %1379 = vset.pattern.permute.xlu1 %v1666_v58  ;;  %1417 = vset.pattern.permute.xlu0 %v1667_v59  ;;  %v264_v46 = vsel %vm259_vm4, %v1943_v57, %v258_v44  ;;  %v1695_v58 = vmov 70   ;;  %vm355_vm4 = vcmp.eq.s32.totalorder %v1997_v31, 20  ;;  %v1706_v44 = vmov 81  }
  0xc2   : > { %489 = vperm.xlu1 %1379, %v1883_v2   ;;  %717 = vperm.xlu0 %1417, %v1883_v2   ;;  %v270_v49 = vsel %vm265_vm5, %v268_v47, %v264_v46  ;;  %vm361_vm5 = vcmp.eq.s32.totalorder %v1997_v31, 21 }
  0xc5   : > { %v1947_v60 = vpop.permute.xlu1 %273  ;;  %v286_v54 = vpop.permute.xlu0 %285 }
  0xc6   : > { %1380 = vset.pattern.permute.xlu1 %v1668_v61  ;;  %1420 = vset.pattern.permute.xlu0 %v1669_v62  ;;  %v276_v51 = vsel %vm271_vm6, %v1947_v60, %v270_v49  ;;  %v1696_v61 = vmov 110   ;;  %vm367_vm6 = vcmp.eq.s32.totalorder %v1997_v31, 22  ;;  %v1707_v49 = vmov 82  }
  0xc7   : > { %495 = vperm.xlu1 %1380, %v1883_v2   ;;  %735 = vperm.xlu0 %1420, %v1883_v2  }
  0xca   : > { %v1950_v63 = vpop.permute.xlu1 %279  ;;  %v304_v60 = vpop.permute.xlu0 %303 }
  0xcb   : > { %1382 = vset.pattern.permute.xlu1 %v1670_v0  ;;  %1423 = vset.pattern.permute.xlu0 %v1672_v4  ;;  %v282_v53 = vsel %vm277_vm7, %v1950_v63, %v276_v51  ;;  %vm373_vm7 = vcmp.eq.s32.totalorder %v1997_v31, 23 }
  0xcc   : > { %507 = vperm.xlu1 %1382, %v1883_v2   ;;  %753 = vperm.xlu0 %1423, %v1883_v2   ;;  %v288_v55 = vsel %vm283_vm8, %v286_v54, %v282_v53  ;;  %vm379_vm8 = vcmp.eq.s32.totalorder %v1997_v31, 24 }
  0xcf   : > { %v1954_v1 = vpop.permute.xlu1 %291  ;;  %v322_v4 = vpop.permute.xlu0 %321 }
  0xd0   : > { %1383 = vset.pattern.permute.xlu1 %v1671_v3  ;;  %1426 = vset.pattern.permute.xlu0 %v1675_v9  ;;  %v294_v57 = vsel %vm289_vm9, %v1954_v1, %v288_v55  ;;  %v1697_v1 = vmov 72   ;;  %v1698_v9 = vmov 73   ;;  %vm385_vm9 = vcmp.eq.s32.totalorder %v1997_v31, 25 }
  0xd1   : > { %513 = vperm.xlu1 %1383, %v1883_v2   ;;  %771 = vperm.xlu0 %1426, %v1883_v2   ;;  %v1709_v55 = vmov 84  }
  0xd4   : > { %v1957_v5 = vpop.permute.xlu1 %297 }
  0xd5   : > { %1385 = vset.pattern.permute.xlu1 %v1673_v6  ;;  %1429 = vset.pattern.permute.xlu0 %v1678_v14  ;;  %v300_v59 = vsel %vm295_vm10, %v1957_v5, %v294_v57  ;;  %vm391_vm10 = vcmp.eq.s32.totalorder %v1997_v31, 26 }
  0xd6   : > { %525 = vperm.xlu1 %1385, %v1883_v2   ;;  %789 = vperm.xlu0 %1429, %v1883_v2   ;;  %v306_v62 = vsel %vm301_vm11, %v304_v60, %v300_v59  ;;  %vm397_vm11 = vcmp.eq.s32.totalorder %v1997_v31, 27 }
  0xd9   : > { %v1961_v7 = vpop.permute.xlu1 %309 }
  0xda   : > { %1386 = vset.pattern.permute.xlu1 %v1674_v8  ;;  %1432 = vset.pattern.permute.xlu0 %v1681_v19  ;;  %v312_v0 = vsel %vm307_vm12, %v1961_v7, %v306_v62  ;;  %vm403_vm12 = vcmp.eq.s32.totalorder %v1997_v31, 28 }
  0xdb   : > { %531 = vperm.xlu1 %1386, %v1883_v2   ;;  %807 = vperm.xlu0 %1432, %v1883_v2  }
  0xde   : > { %v1964_v10 = vpop.permute.xlu1 %315 }
  0xdf   : > { %1388 = vset.pattern.permute.xlu1 %v1676_v11  ;;  %1435 = vset.pattern.permute.xlu0 %v1684_v24  ;;  %v318_v3 = vsel %vm313_vm13, %v1964_v10, %v312_v0  ;;  %v340_v11 = vpop.permute.xlu0 %339  ;;  %v1699_v10 = vmov 113   ;;  %v1701_v24 = vmov 76   ;;  %vm409_vm13 = vcmp.eq.s32.totalorder %v1997_v31, 29 }
  0xe0   : > { %543 = vperm.xlu1 %1388, %v1883_v2   ;;  %825 = vperm.xlu0 %1435, %v1883_v2   ;;  %v324_v5 = vsel %vm319_vm14, %v322_v4, %v318_v3  ;;  %vm415_vm14 = vcmp.eq.s32.totalorder %v1997_v31, 30  ;;  %v1711_v0 = vmov 125  }
  0xe3   : > { %v1968_v12 = vpop.permute.xlu1 %327 }
  0xe4   : > { %1389 = vset.pattern.permute.xlu1 %v1677_v13  ;;  %1438 = vset.pattern.permute.xlu0 %v1687_v29  ;;  %v330_v8 = vsel %vm325_vm15, %v1968_v12, %v324_v5  ;;  %vm421_vm15 = vcmp.eq.s32.totalorder %v1997_v31, 31  ;;  %v1712_v5 = vmov 87  }
  0xe5   : > { %549 = vperm.xlu1 %1389, %v1883_v2   ;;  %843 = vperm.xlu0 %1438, %v1883_v2  }
  0xe8   : > { %v1971_v15 = vpop.permute.xlu1 %333 }
  0xe9   : > { %1391 = vset.pattern.permute.xlu1 %v1679_v16  ;;  %1441 = vset.pattern.permute.xlu0 %v1690_v38  ;;  %v336_v7 = vsel %vm331_vm0, %v1971_v15, %v330_v8  ;;  %v1700_v16 = vmov 75   ;;  %v1704_v38 = vmov 79   ;;  %vm427_vm0 = vcmp.eq.s32.totalorder %v1997_v31, 32 }
  0xea   : > { %561 = vperm.xlu1 %1391, %v1883_v2   ;;  %861 = vperm.xlu0 %1441, %v1883_v2   ;;  %v342_v13 = vsel %vm337_vm1, %v340_v11, %v336_v7  ;;  %vm433_vm1 = vcmp.eq.s32.totalorder %v1997_v31, 33 }
  0xed   : > { %v1975_v17 = vpop.permute.xlu1 %345 }
  0xee   : > { %1392 = vset.pattern.permute.xlu1 %v1680_v18  ;;  %1444 = vset.pattern.permute.xlu0 %v1693_v48  ;;  %v348_v12 = vsel %vm343_vm2, %v1975_v17, %v342_v13  ;;  %v358_v18 = vpop.permute.xlu0 %357  ;;  %vm439_vm2 = vcmp.eq.s32.totalorder %v1997_v31, 34 }
  0xef   : > { %567 = vperm.xlu1 %1392, %v1883_v2   ;;  %879 = vperm.xlu0 %1444, %v1883_v2  }
  0xf2   : > { %v1978_v20 = vpop.permute.xlu1 %351 }
  0xf3   : > { %1394 = vset.pattern.permute.xlu1 %v1682_v21  ;;  %1447 = vset.pattern.permute.xlu0 %v1696_v61  ;;  %v354_v15 = vsel %vm349_vm3, %v1978_v20, %v348_v12  ;;  %v1702_v20 = vmov 116   ;;  %vm445_vm3 = vcmp.eq.s32.totalorder %v1997_v31, 35  ;;  %v1710_v61 = vmov 85  }
  0xf4   : > { %579 = vperm.xlu1 %1394, %v1883_v2   ;;  %897 = vperm.xlu0 %1447, %v1883_v2   ;;  %v360_v19 = vsel %vm355_vm4, %v358_v18, %v354_v15  ;;  %vm451_vm4 = vcmp.eq.s32.totalorder %v1997_v31, 36  ;;  %v1714_v12 = vmov 127  }
  0xf7   : > { %v1982_v22 = vpop.permute.xlu1 %363 }
  0xf8   : > { %1395 = vset.pattern.permute.xlu1 %v1683_v23  ;;  %1450 = vset.pattern.permute.xlu0 %v1699_v10  ;;  %v366_v23 = vsel %vm361_vm5, %v1982_v22, %v360_v19  ;;  %vm457_vm5 = vcmp.eq.s32.totalorder %v1997_v31, 37  ;;  %v1713_v10 = vmov 88   ;;  %v1715_v19 = vmov 90  }
  0xf9   : > { %585 = vperm.xlu1 %1395, %v1883_v2   ;;  %915 = vperm.xlu0 %1450, %v1883_v2  }
  0xfc   : > { %v1985_v25 = vpop.permute.xlu1 %369 }
  0xfd   : > { %1397 = vset.pattern.permute.xlu1 %v1685_v26  ;;  %v372_v17 = vsel %vm367_vm6, %v1985_v25, %v366_v23  ;;  %v376_v26 = vpop.permute.xlu0 %375  ;;  %1453 = vset.pattern.permute.xlu0 %v1702_v20  ;;  %vm463_vm6 = vcmp.eq.s32.totalorder %v1997_v31, 38  ;;  %v1716_v20 = vmov 91  }
  0xfe   : > { %597 = vperm.xlu1 %1397, %v1883_v2   ;;  %933 = vperm.xlu0 %1453, %v1883_v2  }
 0x101   : > { %v1989_v27 = vpop.permute.xlu1 %381 }
 0x102   : > { %1398 = vset.pattern.permute.xlu1 %v1686_v28  ;;  %v378_v28 = vsel %vm373_vm7, %v376_v26, %v372_v17  ;;  %vm469_vm7 = vcmp.eq.s32.totalorder %v1997_v31, 39 }
 0x103   : > { %603 = vperm.xlu1 %1398, %v1883_v2   ;;  %v384_v22 = vsel %vm379_vm8, %v1989_v27, %v378_v28  ;;  %vm475_vm8 = vcmp.eq.s32.totalorder %v1997_v31, 40 }
 0x106   : > { %v1992_v30 = vpop.permute.xlu1 %387 }
 0x107   : > { %1400 = vset.pattern.permute.xlu1 %v1688_v33  ;;  %v390_v25 = vsel %vm385_vm9, %v1992_v30, %v384_v22  ;;  %v394_v33 = vpop.permute.xlu0 %393  ;;  %v1705_v30 = vmov 119   ;;  %vm481_vm9 = vcmp.eq.s32.totalorder %v1997_v31, 41 }
 0x108   : > { %615 = vperm.xlu1 %1400, %v1883_v2   ;;  %1456 = vset.pattern.permute.xlu0 %v1705_v30 }
 0x109   : > { %951 = vperm.xlu0 %1456, %v1883_v2  }
 0x10b   : > { %v2001_v34 = vpop.permute.xlu1 %399  ;;  %v412_v39 = vpop.permute.xlu0 %411 }
 0x10c   : > { %1401 = vset.pattern.permute.xlu1 %v1689_v35  ;;  %v396_v35 = vsel %vm391_vm10, %v394_v33, %v390_v25  ;;  %vm487_vm10 = vcmp.eq.s32.totalorder %v1997_v31, 42  ;;  %v1717_v33 = vmov 93  }
 0x10d   : > { %621 = vperm.xlu1 %1401, %v1883_v2   ;;  %v402_v37 = vsel %vm397_vm11, %v2001_v34, %v396_v35  ;;  %vm493_vm11 = vcmp.eq.s32.totalorder %v1997_v31, 43 }
 0x110   : > { %v2006_v40 = vpop.permute.xlu1 %405 }
 0x111   : > { %1403 = vset.pattern.permute.xlu1 %v1691_v41  ;;  %v408_v27 = vsel %vm403_vm12, %v2006_v40, %v402_v37  ;;  %vm499_vm12 = vcmp.eq.s32.totalorder %v1997_v31, 44 }
 0x112   : > { %633 = vperm.xlu1 %1403, %v1883_v2   ;;  %v414_v41 = vsel %vm409_vm13, %v412_v39, %v408_v27  ;;  %vm505_vm13 = vcmp.eq.s32.totalorder %v1997_v31, 45  ;;  %v1718_v39 = vmov 94  }
 0x115   : > { %v2013_v43 = vpop.permute.xlu1 %417 }
 0x116   : > { %1404 = vset.pattern.permute.xlu1 %v1692_v45  ;;  %v420_v34 = vsel %vm415_vm14, %v2013_v43, %v414_v41  ;;  %v430_v45 = vpop.permute.xlu0 %429  ;;  %vm511_vm14 = vcmp.eq.s32.totalorder %v1997_v31, 46 }
 0x117   : > { %639 = vperm.xlu1 %1404, %v1883_v2  }
 0x11a   : > { %v2021_v50 = vpop.permute.xlu1 %423  ;;  %v448_v51 = vpop.permute.xlu0 %447 }
 0x11b   : > { %1406 = vset.pattern.permute.xlu1 %v1694_v52  ;;  %v426_v40 = vsel %vm421_vm15, %v2021_v50, %v420_v34  ;;  %v1708_v50 = vmov 122   ;;  %vm517_vm15 = vcmp.eq.s32.totalorder %v1997_v31, 47 }
 0x11c   : > { %651 = vperm.xlu1 %1406, %v1883_v2   ;;  %v432_v46 = vsel %vm427_vm0, %v430_v45, %v426_v40  ;;  %1459 = vset.pattern.permute.xlu0 %v1708_v50  ;;  %vm523_vm0 = vcmp.eq.s32.totalorder %v1997_v31, 48 }
 0x11d   : > { %969 = vperm.xlu0 %1459, %v1883_v2  }
 0x11e   : > { %v466_v57 = vpop.permute.xlu0 %465 }
 0x11f   : > { %v2030_v56 = vpop.permute.xlu1 %435 }
 0x120   : > { %1407 = vset.pattern.permute.xlu1 %v1695_v58  ;;  %v438_v48 = vsel %vm433_vm1, %v2030_v56, %v432_v46  ;;  %vm529_vm1 = vcmp.eq.s32.totalorder %v1997_v31, 49  ;;  %v1720_v46 = vmov 97  }
 0x121   : > { %657 = vperm.xlu1 %1407, %v1883_v2   ;;  %1462 = vset.pattern.permute.xlu0 %v1711_v0  ;;  %v1725_v0 = vmov 105  }
 0x122   : > { %987 = vperm.xlu0 %1462, %v1883_v2  }
 0x124   : > { %v2038_v63 = vpop.permute.xlu1 %441 }
 0x125   : > { %1409 = vset.pattern.permute.xlu1 %v1697_v1  ;;  %v444_v43 = vsel %vm439_vm2, %v2038_v63, %v438_v48  ;;  %v484_v63 = vpop.permute.xlu0 %483  ;;  %vm535_vm2 = vcmp.eq.s32.totalorder %v1997_v31, 50 }
 0x126   : > { %669 = vperm.xlu1 %1409, %v1883_v2   ;;  %v450_v52 = vsel %vm445_vm3, %v448_v51, %v444_v43  ;;  %1465 = vset.pattern.permute.xlu0 %v1714_v12  ;;  %vm541_vm3 = vcmp.eq.s32.totalorder %v1997_v31, 51  ;;  %v2147_v51 = vld [vmem:[%s188_s15] sm:$0xff] }
 0x129   : > { %v2047_v6 = vpop.permute.xlu1 %453  ;;  %v502_v8 = vpop.permute.xlu0 %501 }
 0x12a   : > { %1410 = vset.pattern.permute.xlu1 %v1698_v9  ;;  %v456_v54 = vsel %vm451_vm4, %v2047_v6, %v450_v52  ;;  %vm547_vm4 = vcmp.eq.s32.totalorder %v1997_v31, 52 }
 0x12b   : > { %675 = vperm.xlu1 %1410, %v1883_v2  }
 0x12e   : > { %v2055_v14 = vpop.permute.xlu1 %459 }
 0x12f   : > { %1412 = vset.pattern.permute.xlu1 %v1700_v16  ;;  %v462_v56 = vsel %vm457_vm5, %v2055_v14, %v456_v54  ;;  %v520_v14 = vpop.permute.xlu0 %519  ;;  %vm553_vm5 = vcmp.eq.s32.totalorder %v1997_v31, 53 }
 0x130   : > { %687 = vperm.xlu1 %1412, %v1883_v2   ;;  %v468_v58 = vsel %vm463_vm6, %v466_v57, %v462_v56  ;;  %vm559_vm6 = vcmp.eq.s32.totalorder %v1997_v31, 54  ;;  %v1723_v56 = vmov 102  }
 0x133   : > { %v2064_v21 = vpop.permute.xlu1 %471  ;;  %v538_v23 = vpop.permute.xlu0 %537 }
 0x134   : > { %1413 = vset.pattern.permute.xlu1 %v1701_v24  ;;  %v474_v60 = vsel %vm469_vm7, %v2064_v21, %v468_v58  ;;  %vm565_vm7 = vcmp.eq.s32.totalorder %v1997_v31, 55 }
 0x135   : > { %693 = vperm.xlu1 %1413, %v1883_v2  }
 0x138   : > { %v2072_v29 = vpop.permute.xlu1 %477 }
 0x139   : > { %1415 = vset.pattern.permute.xlu1 %v1703_v32  ;;  %v480_v62 = vsel %vm475_vm8, %v2072_v29, %v474_v60  ;;  %v556_v29 = vpop.permute.xlu0 %555  ;;  %vm571_vm8 = vcmp.eq.s32.totalorder %v1997_v31, 56 }
 0x13a   : > { %705 = vperm.xlu1 %1415, %v1883_v2   ;;  %v486_v1 = vsel %vm481_vm9, %v484_v63, %v480_v62  ;;  %vm577_vm9 = vcmp.eq.s32.totalorder %v1997_v31, 57 }
 0x13d   : > { %v2081_v36 = vpop.permute.xlu1 %489 }
 0x13e   : > { %1416 = vset.pattern.permute.xlu1 %v1704_v38  ;;  %v492_v4 = vsel %vm487_vm10, %v2081_v36, %v486_v1  ;;  %v574_v36 = vpop.permute.xlu0 %573  ;;  %vm583_vm10 = vcmp.eq.s32.totalorder %v1997_v31, 58 }
 0x13f   : > { %711 = vperm.xlu1 %1416, %v1883_v2  }
 0x142   : > { %v496_v42 = vpop.permute.xlu1 %495  ;;  %v592_v34 = vpop.permute.xlu0 %591 }
 0x143   : > { %1418 = vset.pattern.permute.xlu1 %v1706_v44  ;;  %v498_v6 = vsel %vm493_vm11, %v496_v42, %v492_v4  ;;  %v1719_v42 = vmov 96   ;;  %vm589_vm11 = vcmp.eq.s32.totalorder %v1997_v31, 59 }
 0x144   : > { %723 = vperm.xlu1 %1418, %v1883_v2   ;;  %v504_v9 = vsel %vm499_vm12, %v502_v8, %v498_v6  ;;  %vm595_vm12 = vcmp.eq.s32.totalorder %v1997_v31, 60  ;;  %v1726_v6 = vmov 106  }
 0x146   : > { %v610_v43 = vpop.permute.xlu0 %609 }
 0x147   : > { %v508_v47 = vpop.permute.xlu1 %507 }
 0x148   : > { %1419 = vset.pattern.permute.xlu1 %v1707_v49  ;;  %v510_v11 = vsel %vm505_vm13, %v508_v47, %v504_v9  ;;  %vm601_vm13 = vcmp.eq.s32.totalorder %v1997_v31, 61  ;;  %v1721_v49 = vmov 99  }
 0x149   : > { %729 = vperm.xlu1 %1419, %v1883_v2  }
 0x14a   : > { %v628_v57 = vpop.permute.xlu0 %627 }
 0x14c   : > { %v514_v53 = vpop.permute.xlu1 %513 }
 0x14d   : > { %1421 = vset.pattern.permute.xlu1 %v1709_v55  ;;  %v516_v13 = vsel %vm511_vm14, %v514_v53, %v510_v11  ;;  %vm607_vm14 = vcmp.eq.s32.totalorder %v1997_v31, 62 }
 0x14e   : > { %741 = vperm.xlu1 %1421, %v1883_v2   ;;  %v522_v16 = vsel %vm517_vm15, %v520_v14, %v516_v13  ;;  %vm613_vm15 = vcmp.eq.s32.totalorder %v1997_v31, 63  ;;  %v646_v1 = vpop.permute.xlu0 %645 }
 0x151   : > { %v526_v59 = vpop.permute.xlu1 %525 }
 0x152   : > { %1422 = vset.pattern.permute.xlu1 %v1710_v61  ;;  %v528_v18 = vsel %vm523_vm0, %v526_v59, %v522_v16  ;;  %vm619_vm0 = vcmp.eq.s32.totalorder %v1997_v31, 64  ;;  %v1724_v61 = vmov 103   ;;  %v664_v11 = vpop.permute.xlu0 %663  ;;  %v1728_v16 = vmov 109  }
 0x153   : > { %747 = vperm.xlu1 %1422, %v1883_v2  }
 0x156   : > { %v532_v3 = vpop.permute.xlu1 %531 }
 0x157   : > { %1424 = vset.pattern.permute.xlu1 %v1712_v5  ;;  %v534_v21 = vsel %vm529_vm1, %v532_v3, %v528_v18  ;;  %vm625_vm1 = vcmp.eq.s32.totalorder %v1997_v31, 65 }
 0x158   : > { %759 = vperm.xlu1 %1424, %v1883_v2   ;;  %v540_v24 = vsel %vm535_vm2, %v538_v23, %v534_v21  ;;  %vm631_vm2 = vcmp.eq.s32.totalorder %v1997_v31, 66  ;;  %v682_v21 = vpop.permute.xlu0 %681 }
 0x15b   : > { %v544_v7 = vpop.permute.xlu1 %543 }
 0x15c   : > { %1425 = vset.pattern.permute.xlu1 %v1713_v10  ;;  %v546_v26 = vsel %vm541_vm3, %v544_v7, %v540_v24  ;;  %vm637_vm3 = vcmp.eq.s32.totalorder %v1997_v31, 67  ;;  %v1727_v7 = vmov 108  }
 0x15d   : > { %765 = vperm.xlu1 %1425, %v1883_v2  }
 0x160   : > { %v550_v15 = vpop.permute.xlu1 %549 }
 0x161   : > { %1427 = vset.pattern.permute.xlu1 %v1715_v19  ;;  %v552_v28 = vsel %vm547_vm4, %v550_v15, %v546_v26  ;;  %vm643_vm4 = vcmp.eq.s32.totalorder %v1997_v31, 68  ;;  %v1729_v19 = vmov 111   ;;  %v1730_v26 = vmov 112  }
 0x162   : > { %777 = vperm.xlu1 %1427, %v1883_v2   ;;  %v558_v22 = vsel %vm553_vm5, %v556_v29, %v552_v28  ;;  %vm649_vm5 = vcmp.eq.s32.totalorder %v1997_v31, 69  ;;  %v1731_v29 = vmov 114  }
 0x165   : > { %v562_v17 = vpop.permute.xlu1 %561 }
 0x166   : > { %1428 = vset.pattern.permute.xlu1 %v1716_v20  ;;  %v564_v25 = vsel %vm559_vm6, %v562_v17, %v558_v22  ;;  %vm655_vm6 = vcmp.eq.s32.totalorder %v1997_v31, 70  ;;  %v700_v22 = vpop.permute.xlu0 %699 }
 0x167   : > { %783 = vperm.xlu1 %1428, %v1883_v2  }
 0x16a   : > { %v568_v32 = vpop.permute.xlu1 %567 }
 0x16b   : > { %1430 = vset.pattern.permute.xlu1 %v1717_v33  ;;  %v570_v35 = vsel %vm565_vm7, %v568_v32, %v564_v25  ;;  %vm661_vm7 = vcmp.eq.s32.totalorder %v1997_v31, 71 }
 0x16c   : > { %795 = vperm.xlu1 %1430, %v1883_v2   ;;  %v576_v37 = vsel %vm571_vm8, %v574_v36, %v570_v35  ;;  %vm667_vm8 = vcmp.eq.s32.totalorder %v1997_v31, 72  ;;  %v1732_v35 = vmov 115  }
 0x16f   : > { %v580_v38 = vpop.permute.xlu1 %579 }
 0x170   : > { %v582_v27 = vsel %vm577_vm9, %v580_v38, %v576_v37  ;;  %1431 = vset.pattern.permute.xlu1 %v1718_v39  ;;  %vm673_vm9 = vcmp.eq.s32.totalorder %v1997_v31, 73  ;;  %v1733_v38 = vmov 117  }
 0x171   : > { %801 = vperm.xlu1 %1431, %v1883_v2  }
 0x174   : > { %v586_v30 = vpop.permute.xlu1 %585 }
 0x175   : > { %v588_v41 = vsel %vm583_vm10, %v586_v30, %v582_v27  ;;  %1433 = vset.pattern.permute.xlu1 %v1719_v42  ;;  %vm679_vm10 = vcmp.eq.s32.totalorder %v1997_v31, 74  ;;  %v718_v27 = vpop.permute.xlu0 %717  ;;  %v1734_v42 = vmov 118  }
 0x176   : > { %813 = vperm.xlu1 %1433, %v1883_v2   ;;  %v594_v44 = vsel %vm589_vm11, %v592_v34, %v588_v41  ;;  %vm685_vm11 = vcmp.eq.s32.totalorder %v1997_v31, 75 }
 0x179   : > { %v598_v40 = vpop.permute.xlu1 %597 }
 0x17a   : > { %v600_v45 = vsel %vm595_vm12, %v598_v40, %v594_v44  ;;  %1434 = vset.pattern.permute.xlu1 %v1720_v46  ;;  %vm691_vm12 = vcmp.eq.s32.totalorder %v1997_v31, 76  ;;  %v1735_v40 = vmov 120  }
 0x17b   : > { %819 = vperm.xlu1 %1434, %v1883_v2   ;;  %v1722_v2 = vmov 100  }
 0x17e   : > { %v604_v47 = vpop.permute.xlu1 %603 }
 0x17f   : > { %v606_v48 = vsel %vm601_vm13, %v604_v47, %v600_v45  ;;  %1436 = vset.pattern.permute.xlu1 %v1721_v49  ;;  %vm697_vm13 = vcmp.eq.s32.totalorder %v1997_v31, 77  ;;  %v736_v45 = vpop.permute.xlu0 %735  ;;  %v1736_v49 = vmov 121  }
 0x180   : > { %831 = vperm.xlu1 %1436, %v2147_v51   ;;  %v612_v50 = vsel %vm607_vm14, %v610_v43, %v606_v48  ;;  %vm703_vm14 = vcmp.eq.s32.totalorder %v1997_v31, 78 }
 0x183   : > { %v616_v52 = vpop.permute.xlu1 %615 }
 0x184   : > { %v618_v53 = vsel %vm613_vm15, %v616_v52, %v612_v50  ;;  %1437 = vset.pattern.permute.xlu1 %v1722_v2  ;;  %vm709_vm15 = vcmp.eq.s32.totalorder %v1997_v31, 79  ;;  %v1737_v52 = vmov 123  }
 0x185   : > { %837 = vperm.xlu1 %1437, %v2147_v51  }
 0x188   : > { %v622_v54 = vpop.permute.xlu1 %621 }
 0x189   : > { %v624_v55 = vsel %vm619_vm0, %v622_v54, %v618_v53  ;;  %1439 = vset.pattern.permute.xlu1 %v1723_v56  ;;  %vm715_vm0 = vcmp.eq.s32.totalorder %v1997_v31, 80  ;;  %v754_v53 = vpop.permute.xlu0 %753  ;;  %v1738_v56 = vmov 124  }
 0x18a   : > { %849 = vperm.xlu1 %1439, %v2147_v51   ;;  %v630_v58 = vsel %vm625_vm1, %v628_v57, %v624_v55  ;;  %vm721_vm1 = vcmp.eq.s32.totalorder %v1997_v31, 81 }
 0x18d   : > { %v634_v59 = vpop.permute.xlu1 %633 }
 0x18e   : > { %v636_v60 = vsel %vm631_vm2, %v634_v59, %v630_v58  ;;  %1440 = vset.pattern.permute.xlu1 %v1724_v61  ;;  %vm727_vm2 = vcmp.eq.s32.totalorder %v1997_v31, 82  ;;  %v1739_v59 = vmov 126  }
 0x18f   : > { %855 = vperm.xlu1 %1440, %v2147_v51  }
 0x192   : > { %v640_v62 = vpop.permute.xlu1 %639 }
 0x193   : > { %v642_v63 = vsel %vm637_vm3, %v640_v62, %v636_v60  ;;  %1442 = vset.pattern.permute.xlu1 %v1725_v0  ;;  %vm733_vm3 = vcmp.eq.s32.totalorder %v1997_v31, 83 }
 0x194   : > { %867 = vperm.xlu1 %1442, %v2147_v51   ;;  %v648_v3 = vsel %vm643_vm4, %v646_v1, %v642_v63  ;;  %vm739_vm4 = vcmp.eq.s32.totalorder %v1997_v31, 84 }
 0x197   : > { %v652_v4 = vpop.permute.xlu1 %651 }
 0x198   : > { %v654_v5 = vsel %vm649_vm5, %v652_v4, %v648_v3  ;;  %1443 = vset.pattern.permute.xlu1 %v1726_v6  ;;  %vm745_vm5 = vcmp.eq.s32.totalorder %v1997_v31, 85 }
 0x199   : > { %873 = vperm.xlu1 %1443, %v2147_v51  }
 0x19c   : > { %v658_v8 = vpop.permute.xlu1 %657 }
 0x19d   : > { %v660_v9 = vsel %vm655_vm6, %v658_v8, %v654_v5  ;;  %1445 = vset.pattern.permute.xlu1 %v1727_v7  ;;  %vm751_vm6 = vcmp.eq.s32.totalorder %v1997_v31, 86 }
 0x19e   : > { %885 = vperm.xlu1 %1445, %v2147_v51   ;;  %v666_v10 = vsel %vm661_vm7, %v664_v11, %v660_v9  ;;  %vm757_vm7 = vcmp.eq.s32.totalorder %v1997_v31, 87  ;;  %v772_v11 = vpop.permute.xlu0 %771 }
 0x1a1   : > { %v670_v13 = vpop.permute.xlu1 %669 }
 0x1a2   : > { %v672_v14 = vsel %vm667_vm8, %v670_v13, %v666_v10  ;;  %1446 = vset.pattern.permute.xlu1 %v1728_v16  ;;  %vm763_vm8 = vcmp.eq.s32.totalorder %v1997_v31, 88 }
 0x1a3   : > { %891 = vperm.xlu1 %1446, %v2147_v51  }
 0x1a6   : > { %v676_v15 = vpop.permute.xlu1 %675 }
 0x1a7   : > { %v678_v18 = vsel %vm673_vm9, %v676_v15, %v672_v14  ;;  %1448 = vset.pattern.permute.xlu1 %v1729_v19  ;;  %vm769_vm9 = vcmp.eq.s32.totalorder %v1997_v31, 89  ;;  %v790_v14 = vpop.permute.xlu0 %789 }
 0x1a8   : > { %903 = vperm.xlu1 %1448, %v2147_v51   ;;  %v684_v23 = vsel %vm679_vm10, %v682_v21, %v678_v18  ;;  %vm775_vm10 = vcmp.eq.s32.totalorder %v1997_v31, 90 }
 0x1ab   : > { %v688_v24 = vpop.permute.xlu1 %687  ;;  %v808_v21 = vpop.permute.xlu0 %807 }
 0x1ac   : > { %v690_v17 = vsel %vm685_vm11, %v688_v24, %v684_v23  ;;  %1449 = vset.pattern.permute.xlu1 %v1730_v26  ;;  %vm781_vm11 = vcmp.eq.s32.totalorder %v1997_v31, 91 }
 0x1ad   : > { %909 = vperm.xlu1 %1449, %v2147_v51  }
 0x1b0   : > { %v694_v20 = vpop.permute.xlu1 %693 }
 0x1b1   : > { %v696_v28 = vsel %vm691_vm12, %v694_v20, %v690_v17  ;;  %1451 = vset.pattern.permute.xlu1 %v1731_v29  ;;  %vm787_vm12 = vcmp.eq.s32.totalorder %v1997_v31, 92  ;;  %v826_v20 = vpop.permute.xlu0 %825 }
 0x1b2   : > { %921 = vperm.xlu1 %1451, %v2147_v51   ;;  %v702_v32 = vsel %vm697_vm13, %v700_v22, %v696_v28  ;;  %vm793_vm13 = vcmp.eq.s32.totalorder %v1997_v31, 93 }
 0x1b5   : > { %v706_v25 = vpop.permute.xlu1 %705 }
 0x1b6   : > { %v708_v33 = vsel %vm703_vm14, %v706_v25, %v702_v32  ;;  %1452 = vset.pattern.permute.xlu1 %v1732_v35  ;;  %vm799_vm14 = vcmp.eq.s32.totalorder %v1997_v31, 94  ;;  %v844_v25 = vpop.permute.xlu0 %843 }
 0x1b7   : > { %927 = vperm.xlu1 %1452, %v2147_v51  }
 0x1ba   : > { %v712_v36 = vpop.permute.xlu1 %711 }
 0x1bb   : > { %v714_v37 = vsel %vm709_vm15, %v712_v36, %v708_v33  ;;  %1454 = vset.pattern.permute.xlu1 %v1733_v38  ;;  %vm805_vm15 = vcmp.eq.s32.totalorder %v1997_v31, 95  ;;  %v862_v38 = vpop.permute.xlu0 %861 }
 0x1bc   : > { %939 = vperm.xlu1 %1454, %v2147_v51   ;;  %v720_v39 = vsel %vm715_vm0, %v718_v27, %v714_v37  ;;  %vm811_vm0 = vcmp.eq.s32.totalorder %v1997_v31, 96 }
 0x1bf   : > { %v724_v30 = vpop.permute.xlu1 %723 }
 0x1c0   : > { %v726_v41 = vsel %vm721_vm1, %v724_v30, %v720_v39  ;;  %1455 = vset.pattern.permute.xlu1 %v1734_v42  ;;  %vm817_vm1 = vcmp.eq.s32.totalorder %v1997_v31, 97  ;;  %v880_v42 = vpop.permute.xlu0 %879 }
 0x1c1   : > { %945 = vperm.xlu1 %1455, %v2147_v51  }
 0x1c4   : > { %v730_v34 = vpop.permute.xlu1 %729 }
 0x1c5   : > { %v732_v44 = vsel %vm727_vm2, %v730_v34, %v726_v41  ;;  %1457 = vset.pattern.permute.xlu1 %v1735_v40  ;;  %vm823_vm2 = vcmp.eq.s32.totalorder %v1997_v31, 98 }
 0x1c6   : > { %957 = vperm.xlu1 %1457, %v2147_v51   ;;  %v738_v46 = vsel %vm733_vm3, %v736_v45, %v732_v44  ;;  %vm829_vm3 = vcmp.eq.s32.totalorder %v1997_v31, 99 }
 0x1c9   : > { %v742_v47 = vpop.permute.xlu1 %741 }
 0x1ca   : > { %v744_v48 = vsel %vm739_vm4, %v742_v47, %v738_v46  ;;  %1458 = vset.pattern.permute.xlu1 %v1736_v49  ;;  %vm835_vm4 = vcmp.eq.s32.totalorder %v1997_v31, 100  ;;  %v898_v46 = vpop.permute.xlu0 %897 }
 0x1cb   : > { %963 = vperm.xlu1 %1458, %v2147_v51  }
 0x1ce   : > { %v748_v43 = vpop.permute.xlu1 %747 }
 0x1cf   : > { %v750_v50 = vsel %vm745_vm5, %v748_v43, %v744_v48  ;;  %1460 = vset.pattern.permute.xlu1 %v1737_v52  ;;  %vm841_vm5 = vcmp.eq.s32.totalorder %v1997_v31, 101 }
 0x1d0   : > { %975 = vperm.xlu1 %1460, %v2147_v51   ;;  %v756_v2 = vsel %vm751_vm6, %v754_v53, %v750_v50  ;;  %vm847_vm6 = vcmp.eq.s32.totalorder %v1997_v31, 102  ;;  %v916_v50 = vpop.permute.xlu0 %915 }
 0x1d3   : > { %v760_v54 = vpop.permute.xlu1 %759 }
 0x1d4   : > { %v762_v55 = vsel %vm757_vm7, %v760_v54, %v756_v2  ;;  %1461 = vset.pattern.permute.xlu1 %v1738_v56  ;;  %vm853_vm7 = vcmp.eq.s32.totalorder %v1997_v31, 103 }
 0x1d5   : > { %981 = vperm.xlu1 %1461, %v2147_v51  }
 0x1d8   : > { %v766_v57 = vpop.permute.xlu1 %765 }
 0x1d9   : > { %v768_v58 = vsel %vm763_vm8, %v766_v57, %v762_v55  ;;  %1463 = vset.pattern.permute.xlu1 %v1739_v59  ;;  %vm859_vm8 = vcmp.eq.s32.totalorder %v1997_v31, 104  ;;  %v934_v55 = vpop.permute.xlu0 %933 }
 0x1da   : > { %993 = vperm.xlu1 %1463, %v2147_v51  }
 0x1dd   : > { %v778_v60 = vpop.permute.xlu1 %777 }
 0x1de   : > { %1464 = vset.pattern.permute.xlu1 %v1714_v12  ;;  %v774_v12 = vsel %vm769_vm9, %v772_v11, %v768_v58  ;;  %vm865_vm9 = vcmp.eq.s32.totalorder %v1997_v31, 105 }
 0x1df   : > { %999 = vperm.xlu1 %1464, %v2147_v51   ;;  %v780_v51 = vsel %vm775_vm10, %v778_v60, %v774_v12  ;;  %vm871_vm10 = vcmp.eq.s32.totalorder %v1997_v31, 106  ;;  %v952_v60 = vpop.permute.xlu0 %951 }
 0x1e2   : > { %v784_v61 = vpop.permute.xlu1 %783 }
 0x1e3   : > { %v786_v13 = vsel %vm781_vm11, %v784_v61, %v780_v51  ;;  %vm877_vm11 = vcmp.eq.s32.totalorder %v1997_v31, 107 }
 0x1e4   : > { %v792_v16 = vsel %vm787_vm12, %v790_v14, %v786_v13  ;;  %vm883_vm12 = vcmp.eq.s32.totalorder %v1997_v31, 108 }
 0x1e7   : > { %v796_v62 = vpop.permute.xlu1 %795 }
 0x1e8   : > { %v798_v15 = vsel %vm793_vm13, %v796_v62, %v792_v16  ;;  %vm889_vm13 = vcmp.eq.s32.totalorder %v1997_v31, 109 }
 0x1ec   : > { %v802_v63 = vpop.permute.xlu1 %801 }
 0x1ed   : > { %v804_v19 = vsel %vm799_vm14, %v802_v63, %v798_v15  ;;  %vm895_vm14 = vcmp.eq.s32.totalorder %v1997_v31, 110 }
 0x1ee   : > { %v810_v23 = vsel %vm805_vm15, %v808_v21, %v804_v19  ;;  %vm901_vm15 = vcmp.eq.s32.totalorder %v1997_v31, 111 }
 0x1f1   : > { %v814_v0 = vpop.permute.xlu1 %813 }
 0x1f2   : > { %v816_v24 = vsel %vm811_vm0, %v814_v0, %v810_v23  ;;  %vm907_vm0 = vcmp.eq.s32.totalorder %v1997_v31, 112 }
 0x1f6   : > { %v820_v1 = vpop.permute.xlu1 %819 }
 0x1f7   : > { %v822_v26 = vsel %vm817_vm1, %v820_v1, %v816_v24  ;;  %vm913_vm1 = vcmp.eq.s32.totalorder %v1997_v31, 113  ;;  %v970_v1 = vpop.permute.xlu0 %969 }
 0x1f8   : > { %v828_v28 = vsel %vm823_vm2, %v826_v20, %v822_v26  ;;  %vm919_vm2 = vcmp.eq.s32.totalorder %v1997_v31, 114 }
 0x1fb   : > { %v832_v3 = vpop.permute.xlu1 %831 }
 0x1fc   : > { %v834_v29 = vsel %vm829_vm3, %v832_v3, %v828_v28  ;;  %vm925_vm3 = vcmp.eq.s32.totalorder %v1997_v31, 115 }
 0x200   : > { %v838_v4 = vpop.permute.xlu1 %837 }
 0x201   : > { %v840_v32 = vsel %vm835_vm4, %v838_v4, %v834_v29  ;;  %vm931_vm4 = vcmp.eq.s32.totalorder %v1997_v31, 116 }
 0x202   : > { %v846_v33 = vsel %vm841_vm5, %v844_v25, %v840_v32  ;;  %vm937_vm5 = vcmp.eq.s32.totalorder %v1997_v31, 117 }
 0x205   : > { %v850_v5 = vpop.permute.xlu1 %849 }
 0x206   : > { %v852_v35 = vsel %vm847_vm6, %v850_v5, %v846_v33  ;;  %vm943_vm6 = vcmp.eq.s32.totalorder %v1997_v31, 118 }
 0x20a   : > { %v856_v6 = vpop.permute.xlu1 %855 }
 0x20b   : > { %v858_v37 = vsel %vm853_vm7, %v856_v6, %v852_v35  ;;  %vm949_vm7 = vcmp.eq.s32.totalorder %v1997_v31, 119 }
 0x20c   : > { %v864_v27 = vsel %vm859_vm8, %v862_v38, %v858_v37  ;;  %vm955_vm8 = vcmp.eq.s32.totalorder %v1997_v31, 120 }
 0x20f   : > { %v868_v8 = vpop.permute.xlu1 %867 }
 0x210   : > { %v870_v39 = vsel %vm865_vm9, %v868_v8, %v864_v27  ;;  %vm961_vm9 = vcmp.eq.s32.totalorder %v1997_v31, 121  ;;  %v988_v8 = vpop.permute.xlu0 %987 }
 0x214   : > { %v874_v9 = vpop.permute.xlu1 %873 }
 0x215   : > { %v876_v41 = vsel %vm871_vm10, %v874_v9, %v870_v39  ;;  %vm967_vm10 = vcmp.eq.s32.totalorder %v1997_v31, 122  ;;  %v1467_v9 = vld [vmem:[%s197_s16] sm:$0xff] }
 0x216   : > { %v882_v34 = vsel %vm877_vm11, %v880_v42, %v876_v41  ;;  %vm973_vm11 = vcmp.eq.s32.totalorder %v1997_v31, 123 }
 0x219   : > { %v886_v7 = vpop.permute.xlu1 %885 }
 0x21a   : > { %v888_v44 = vsel %vm883_vm12, %v886_v7, %v882_v34  ;;  %vm979_vm12 = vcmp.eq.s32.totalorder %v1997_v31, 124 }
 0x21e   : > { %v892_v10 = vpop.permute.xlu1 %891 }
 0x21f   : > { %v894_v45 = vsel %vm889_vm13, %v892_v10, %v888_v44  ;;  %vm985_vm13 = vcmp.eq.s32.totalorder %v1467_v9, 125 }
 0x220   : > { %v900_v47 = vsel %vm895_vm14, %v898_v46, %v894_v45  ;;  %vm991_vm14 = vcmp.eq.s32.totalorder %v1467_v9, 126 }
 0x223   : > { %v904_v18 = vpop.permute.xlu1 %903 }
 0x224   : > { %v906_v48 = vsel %vm901_vm15, %v904_v18, %v900_v47  ;;  %vm997_vm15 = vcmp.eq.s32.totalorder %v1467_v9, 127 }
 0x228   : > { %v910_v17 = vpop.permute.xlu1 %909 }
 0x229   : > { %v912_v43 = vsel %vm907_vm0, %v910_v17, %v906_v48 }
 0x22a   : > { %v918_v52 = vsel %vm913_vm1, %v916_v50, %v912_v43 }
 0x22d   : > { %v922_v22 = vpop.permute.xlu1 %921 }
 0x22e   : > { %v924_v53 = vsel %vm919_vm2, %v922_v22, %v918_v52 }
 0x232   : > { %v928_v36 = vpop.permute.xlu1 %927 }
 0x233   : > { %v930_v54 = vsel %vm925_vm3, %v928_v36, %v924_v53 }
 0x234   : > { %v936_v56 = vsel %vm931_vm4, %v934_v55, %v930_v54 }
 0x237   : > { %v940_v30 = vpop.permute.xlu1 %939 }
 0x238   : > { %v942_v57 = vsel %vm937_vm5, %v940_v30, %v936_v56 }
 0x23c   : > { %v946_v40 = vpop.permute.xlu1 %945 }
 0x23d   : > { %v948_v59 = vsel %vm943_vm6, %v946_v40, %v942_v57 }
 0x23e   : > { %v954_v61 = vsel %vm949_vm7, %v952_v60, %v948_v59 }
 0x241   : > { %v958_v49 = vpop.permute.xlu1 %957 }
 0x242   : > { %v960_v62 = vsel %vm955_vm8, %v958_v49, %v954_v61 }
 0x246   : > { %v964_v2 = vpop.permute.xlu1 %963 }
 0x247   : > { %v966_v0 = vsel %vm961_vm9, %v964_v2, %v960_v62 }
 0x248   : > { %v972_v3 = vsel %vm967_vm10, %v970_v1, %v966_v0 }
 0x24b   : > { %v976_v58 = vpop.permute.xlu1 %975 }
 0x24c   : > { %v978_v4 = vsel %vm973_vm11, %v976_v58, %v972_v3 }
 0x250   : > { %v982_v63 = vpop.permute.xlu1 %981 }
 0x251   : > { %v984_v6 = vsel %vm979_vm12, %v982_v63, %v978_v4 }
 0x252   : > { %v990_v7 = vsel %vm985_vm13, %v988_v8, %v984_v6 }
 0x255   : > { %v994_v5 = vpop.permute.xlu1 %993 }
 0x256   : > { %v996_v11 = vsel %vm991_vm14, %v994_v5, %v990_v7 }
 0x25a   : > { %v1000_v12 = vpop.permute.xlu1 %999 }
 0x25b   : > { %v1002_v31 = vsel %vm997_vm15, %v1000_v12, %v996_v11 }
 0x25c   : > { %1003 = vst [vmem:[%s222_s18] sm:$0xff] %v1002_v31 }
 0x25d   : > { %1537 = shalt.err (!%p1534_p6)
}
 0x25e   : > { %s1538_s4 = scalar_lea.hbm %s2239_s29, 128  ;;  %s1542_s26 = scalar_lea.hbm %s2283_s2, 256 }
 0x25f   : > { %p1539_p7 = scmp.ne.s32.totalorder %s2239_s29, %s1538_s4  ;;  %p1543_p4 = scmp.lt.s32.totalorder %s2239_s29, %s2283_s2 }
 0x260   : > { %p1544_p10 = scmp.lt.s32.totalorder %s1542_s26, %s1538_s4 }
 0x261   : > { %p1540_p1 = pnand %p1539_p7, %p1807_p9 }
 0x262   : > { %p1545_p8 = por %p1544_p10, %p1543_p4 }
 0x263   : > { %p1541_p2 = pneg %p1540_p1 }
 0x265   : > { %p1546_p0 = pnand %p1545_p8, %p1541_p2 }
 0x267   : > { %1549 = shalt.err (!%p1546_p0)
}
 0x268   : > { %1146 = dma.vmem_to_hbm [thread:$0]  (%p1807_p9), %s1020_s19, 128, %s2239_s29, %s1005_s3  }
 0x269 PF: > { %s1031_s5 = sand.u32 1, %s1588_s9   ;;  %p2290_p3 = scmp.ge.s32.totalorder %s1608_s14, 2 }
 0x26a   : > { %s1032_s16 = scalar_lea.sflag [#allocation4], %s1031_s5 }
 0x26b   : > { %p1156_p13 = pnand %p2290_p3, %p1814_p11 }
 0x26d   : > { %p1157_p5 = pneg %p1156_p13 }
 0x26f   : > { %1583 = dma.done.wait (%p1157_p5), %s1032_s16, 128  }
 0x270   : > { %1585 = vsyncadd (%p1157_p5), %s1032_s16, 4294967168  ;;  %s21_s14 = sadd.s32 1, %s1608_s14   ;;  %s2291_s9 = smov %s1592_s10 }
 0x271   : > { %p18_p12 = scmp.ge.s32.totalorder %s21_s14, 4   ;;  %s2292_s10 = smov %s1596_s11 }
 0x272   : > { %s2293_s11 = smov %s1812_s23  ;;  %s2294_s12 = smov %s1604_s13 }
 0x273   : > { %s2295_s13 = smov %s2297_s17  ;;  %20 = sbr.rel (!%p18_p12) target bundleno = 8 (0x8), region = 86 }
 0x278   :  { %1037 = vsyncpa [#allocation3], 1 }
 0x279   :  { %1039 = vsyncpa [#allocation3 + $0x1], 1 }
 0x27a   :  { %1040 = vsyncpa [#allocation6], 1 }
 0x27b   :  { %1042 = vsyncpa [#allocation6 + $0x1], 1 }
 0x27c   :  { %1043 = vsyncpa [#allocation4], 1 }
 0x27d   :  { %1045 = vsyncpa [#allocation4 + $0x1], 1 }

</bundles_post_ra>
